<compile_context>
chip_gen: v7x
topology: tpu7x:2x2x1
jax: 0.10.0
libtpu: 0.0.40
codegen_flags: <defaults>
</compile_context>

<pallas_src>
import jax
import jax.numpy as jnp
from jax.experimental import pallas as pl
from jax.experimental.pallas import tpu as pltpu


# ----------------------------------------------------------------------------
# Synthetic model configuration
# ----------------------------------------------------------------------------
IMG_H, IMG_W = 16, 16
IN_CH = 3
CIN_PAD = 8                 # image channels zero-padded to 8 -> W*CIN_PAD = 128
FEAT_CH = 16                # W*FEAT_CH = 256 lanes
NUM_ANCHORS = 3
ANCHOR_SIZES = (2.0, 4.0, 8.0)
PROPOSALS_PER_IMAGE = 8
POOL = 4
NUM_CLASSES = 5             # background + 4 foreground classes
FC_DIM = 64

RPN_HEAD_OUT = 16           # 3 objectness + 12 bbox deltas + 1 pad (per pixel)
FAST_HEAD_OUT = 128         # 5 cls + 20 bbox deltas + pad -> lane-dense store


def init_params(key):
    def w(key, shape, scale=0.05):
        return scale * jax.random.normal(key, shape, dtype=jnp.float32)

    keys = jax.random.split(key, 8)
    return {
        "backbone_w": w(keys[0], (9 * IN_CH, FEAT_CH)),
        "backbone_b": jnp.zeros((FEAT_CH,), jnp.float32),
        "rpn_conv_w": w(keys[1], (9 * FEAT_CH, FEAT_CH)),
        "rpn_conv_b": jnp.zeros((FEAT_CH,), jnp.float32),
        "rpn_cls_w":  w(keys[2], (FEAT_CH, NUM_ANCHORS)),
        "rpn_cls_b":  jnp.zeros((NUM_ANCHORS,), jnp.float32),
        "rpn_bbox_w": w(keys[3], (FEAT_CH, NUM_ANCHORS * 4)),
        "rpn_bbox_b": jnp.zeros((NUM_ANCHORS * 4,), jnp.float32),
        "fc1_w":      w(keys[4], (POOL * POOL * FEAT_CH, FC_DIM)),
        "fc1_b":      jnp.zeros((FC_DIM,), jnp.float32),
        "cls_w":      w(keys[5], (FC_DIM, NUM_CLASSES)),
        "cls_b":      jnp.zeros((NUM_CLASSES,), jnp.float32),
        "bbox_w":     w(keys[6], (FC_DIM, NUM_CLASSES * 4)),
        "bbox_b":     jnp.zeros((NUM_CLASSES * 4,), jnp.float32),
    }


# ----------------------------------------------------------------------------
# Kernel A: backbone conv + rpn conv + merged rpn heads + masked sigmoid
#           (grid over N images, "parallel" for megacore)
# ----------------------------------------------------------------------------
def _backbone_rpn_kernel(img_ref, bbw_ref, bbb_ref, rpw_ref, rpb_ref,
                         hdw_ref, hdb_ref, feat_ref, rpn_ref):
    H, WC = feat_ref.shape                      # (H, W*FEAT_CH) lane-dense

    # -- backbone 3x3 conv + ReLU: 3 dy-band matmuls, K = W*CIN_PAD = 128 -----
    acc = jnp.zeros((H, WC), jnp.float32)
    for dy in range(3):
        acc = acc + jnp.dot(img_ref[dy:dy + H, :], bbw_ref[dy, :, :],
                            preferred_element_type=jnp.float32)
    feat = jnp.maximum(acc + bbb_ref[...], 0.0)
    feat_bf = feat.astype(jnp.bfloat16)
    feat_ref[...] = feat_bf                     # lane-dense bf16 HBM writeback

    # -- RPN 3x3 conv + ReLU: y-pad via 2-row concat, 3 dy-band matmuls, K=256
    zrow = jnp.zeros((1, WC), jnp.bfloat16)
    featp = jnp.concatenate([zrow, feat_bf, zrow], axis=0)       # (H+2, WC)
    acc2 = jnp.zeros((H, WC), jnp.float32)
    for dy in range(3):
        acc2 = acc2 + jnp.dot(featp[dy:dy + H, :], rpw_ref[dy, :, :],
                              preferred_element_type=jnp.float32)
    h = jnp.maximum(acc2 + rpb_ref[...], 0.0)

    # -- merged RPN heads: block-diagonal (per-pixel) matmul, K = 256 ---------
    head = jnp.dot(h.astype(jnp.bfloat16), hdw_ref[...],
                   preferred_element_type=jnp.float32) + hdb_ref[...]

    # sigmoid only on objectness lanes ((lane % 16) < NUM_ANCHORS);
    # masked BEFORE exp so bbox-delta lanes never hit exp -> no inf.
    lane = jax.lax.broadcasted_iota(jnp.int32, head.shape, 1)
    is_obj = jnp.bitwise_and(lane, RPN_HEAD_OUT - 1) < NUM_ANCHORS
    z = jnp.where(is_obj, head, 0.0)
    sig = pl.reciprocal(1.0 + jnp.exp(-z), approx=True)
    rpn_ref[...] = jnp.where(is_obj, sig, head)


def _backbone_rpn_call(imgp, bb_bands, bb_bias, rpn_bands, rpn_bias,
                       head_bd, head_bias):
    N, HP, WCI = imgp.shape
    H = HP - 2
    WC = bb_bands.shape[2]                      # W * FEAT_CH
    WHO = head_bd.shape[1]                      # W * RPN_HEAD_OUT
    return pl.pallas_call(
        _backbone_rpn_kernel,
        grid=(N,),
        out_shape=(jax.ShapeDtypeStruct((N, H, WC), jnp.bfloat16),
                   jax.ShapeDtypeStruct((N, H, WHO), jnp.float32)),
        in_specs=[
            pl.BlockSpec((None, HP, WCI), lambda n: (n, 0, 0)),   # padded image
            pl.BlockSpec((3, WCI, WC), lambda n: (0, 0, 0)),      # backbone bands
            pl.BlockSpec((1, WC), lambda n: (0, 0)),              # backbone bias
            pl.BlockSpec((3, WC, WC), lambda n: (0, 0, 0)),       # rpn conv bands
            pl.BlockSpec((1, WC), lambda n: (0, 0)),              # rpn conv bias
            pl.BlockSpec((WC, WHO), lambda n: (0, 0)),            # rpn head blkdiag
            pl.BlockSpec((1, WHO), lambda n: (0, 0)),             # rpn head bias
        ],
        out_specs=(
            pl.BlockSpec((None, H, WC), lambda n: (n, 0, 0)),
            pl.BlockSpec((None, H, WHO), lambda n: (n, 0, 0)),
        ),
        compiler_params=pltpu.CompilerParams(
            dimension_semantics=("parallel",)),
    )(imgp, bb_bands, bb_bias, rpn_bands, rpn_bias, head_bd, head_bias)


# ----------------------------------------------------------------------------
# Kernel B: fc1 (single K=256 matmul) + merged cls/bbox head + masked softmax
# (ROI features arrive pre-gathered, lane-dense (R, POOL*POOL*C) bf16)
# ----------------------------------------------------------------------------
def _fastrcnn_head_kernel(roi_ref, w1_ref, b1_ref, w2_ref, b2_ref, out_ref):
    # fc1: (R, 256) @ (256, FC_DIM), one MXU push chain, f32 accumulation.
    h = jnp.dot(roi_ref[...], w1_ref[...], preferred_element_type=jnp.float32)
    h = jnp.maximum(h + b1_ref[...], 0.0)

    # merged heads: [class logits(NC) | bbox deltas(4*NC) | zero pad]
    head = jnp.dot(h.astype(jnp.bfloat16), w2_ref[...],
                   preferred_element_type=jnp.float32) + b2_ref[...]

    # softmax over the class lanes only; bbox-delta lanes pass through.
    lane = jax.lax.broadcasted_iota(jnp.int32, head.shape, 1)
    cls_mask = lane < NUM_CLASSES
    m = jnp.max(jnp.where(cls_mask, head, -1e30), axis=-1, keepdims=True)
    e = jnp.where(cls_mask, jnp.exp(jnp.where(cls_mask, head - m, 0.0)), 0.0)
    denom = jnp.sum(e, axis=-1, keepdims=True)
    scores = e * pl.reciprocal(denom, approx=True)
    out_ref[...] = jnp.where(cls_mask, scores, head)


def _fastrcnn_head_call(roi, w1, b1, w2, b2):
    R = roi.shape[0]
    vmem = pl.BlockSpec(memory_space=pltpu.MemorySpace.VMEM)
    return pl.pallas_call(
        _fastrcnn_head_kernel,
        out_shape=jax.ShapeDtypeStruct((R, FAST_HEAD_OUT), jnp.float32),
        in_specs=[vmem] * 5,
        out_specs=vmem,
    )(roi, w1, b1, w2, b2)


# ----------------------------------------------------------------------------
# JAX glue: banded conv weights, anchors, box decode, ROI sampling
# ----------------------------------------------------------------------------
def _conv_band_weights(w_flat, cin, cin_pad, cout, W):
    """3x3 conv weights -> 3 dy-band matrices of shape (W*cin_pad, W*cout).

    band[dy][xi*cin_pad + ci, xo*cout + co] = W[dy, dx][ci, co] with
    xi = xo + dx - 1 (x zero-padding encoded by omitting out-of-range blocks).
    """
    w9 = w_flat.reshape(3, 3, cin, cout)
    xi = jnp.arange(W)[None, :, None]
    xo = jnp.arange(W)[None, None, :]
    dx = jnp.arange(3)[:, None, None]
    shift = (xi == xo + dx - 1).astype(jnp.float32)          # (3, W, W)
    band = jnp.einsum("dio,ydcf->yicof", shift, w9)          # (3, W, cin, W, cout)
    band = jnp.pad(band, ((0, 0), (0, 0), (0, cin_pad - cin), (0, 0), (0, 0)))
    return band.reshape(3, W * cin_pad, W * cout)


def _blockdiag(w, W):
    cin, cout = w.shape
    bd = jnp.einsum("io,cf->icof", jnp.eye(W, dtype=w.dtype), w)
    return bd.reshape(W * cin, W * cout)


def make_anchors(h, w):
    ys, xs = jnp.meshgrid(jnp.arange(h, dtype=jnp.float32) + 0.5,
                          jnp.arange(w, dtype=jnp.float32) + 0.5,
                          indexing="ij")
    cx = jnp.repeat(xs.reshape(-1), NUM_ANCHORS)
    cy = jnp.repeat(ys.reshape(-1), NUM_ANCHORS)
    sizes = jnp.tile(jnp.asarray(ANCHOR_SIZES, jnp.float32), h * w)
    return jnp.stack([cx, cy, sizes, sizes], axis=-1)          # (H*W*A, 4)


def decode_boxes(anchors_cxcywh, deltas, img_h, img_w):
    acx, acy, aw, ah = [anchors_cxcywh[:, i] for i in range(4)]
    dx, dy, dw, dh = [deltas[:, i] for i in range(4)]
    cx = acx + dx * aw
    cy = acy + dy * ah
    w = aw * jnp.exp(jnp.clip(dw, -4.0, 4.0))
    h = ah * jnp.exp(jnp.clip(dh, -4.0, 4.0))
    x1 = jnp.clip(cx - 0.5 * w, 0.0, img_w - 1.0)
    y1 = jnp.clip(cy - 0.5 * h, 0.0, img_h - 1.0)
    x2 = jnp.clip(cx + 0.5 * w, 0.0, img_w - 1.0)
    y2 = jnp.clip(cy + 0.5 * h, 0.0, img_h - 1.0)
    x2 = jnp.maximum(x2, x1 + 1.0)
    y2 = jnp.maximum(y2, y1 + 1.0)
    return jnp.stack([x1, y1, x2, y2], axis=-1)


def corners_to_cxcywh(boxes):
    x1, y1, x2, y2 = [boxes[:, i] for i in range(4)]
    return jnp.stack([(x1 + x2) * 0.5, (y1 + y2) * 0.5, x2 - x1, y2 - y1], axis=-1)


def gather_roi_features(feat, boxes, batch_idx):
    """Vectorized nearest-neighbor ROI sampling (one XLA gather).

    feat: (N, H, W*C) bf16 (lane-dense); returns (R, POOL*POOL*C) bf16 with
    lane ordering (sy, sx, c) matching fc1_w's spatial-major row layout.
    """
    # TODO(synk): real torchvision Faster R-CNN uses RoIAlign with bilinear
    # averaging; this is POOLxPOOL nearest-neighbor point sampling.
    N, H, WC = feat.shape
    C = FEAT_CH
    W = WC // C
    R = boxes.shape[0]
    x1, y1, x2, y2 = boxes[:, 0], boxes[:, 1], boxes[:, 2], boxes[:, 3]
    grid = (jnp.arange(POOL, dtype=jnp.float32) + 0.5) / POOL
    xs = x1[:, None] + (x2 - x1)[:, None] * grid[None, :]
    ys = y1[:, None] + (y2 - y1)[:, None] * grid[None, :]
    xi = jnp.clip(jnp.floor(xs), 0, W - 1).astype(jnp.int32)   # (R, POOL)
    yi = jnp.clip(jnp.floor(ys), 0, H - 1).astype(jnp.int32)   # (R, POOL)
    featv = feat.reshape(N, H, W, C)
    roi = featv[batch_idx[:, None, None], yi[:, :, None], xi[:, None, :], :]
    return roi.reshape(R, POOL * POOL * C)


def _prepare_weights(params, W):
    bb_bands = _conv_band_weights(params["backbone_w"], IN_CH, CIN_PAD,
                                  FEAT_CH, W).astype(jnp.bfloat16)
    bb_bias = jnp.tile(params["backbone_b"], W).reshape(1, W * FEAT_CH)

    rpn_bands = _conv_band_weights(params["rpn_conv_w"], FEAT_CH, FEAT_CH,
                                   FEAT_CH, W).astype(jnp.bfloat16)
    rpn_bias = jnp.tile(params["rpn_conv_b"], W).reshape(1, W * FEAT_CH)

    head_w = jnp.concatenate(
        [params["rpn_cls_w"], params["rpn_bbox_w"],
         jnp.zeros((FEAT_CH, RPN_HEAD_OUT - 5 * NUM_ANCHORS), jnp.float32)],
        axis=1)                                              # (16, 16)
    head_bd = _blockdiag(head_w, W).astype(jnp.bfloat16)     # (W*16, W*16)
    head_b = jnp.concatenate(
        [params["rpn_cls_b"], params["rpn_bbox_b"],
         jnp.zeros((RPN_HEAD_OUT - 5 * NUM_ANCHORS,), jnp.float32)])
    head_bias = jnp.tile(head_b, W).reshape(1, W * RPN_HEAD_OUT)

    w1 = params["fc1_w"].astype(jnp.bfloat16)                # (256, 64)
    b1 = params["fc1_b"].reshape(1, FC_DIM)

    fast_hw = jnp.concatenate(
        [params["cls_w"], params["bbox_w"],
         jnp.zeros((FC_DIM, FAST_HEAD_OUT - 5 * NUM_CLASSES), jnp.float32)],
        axis=1).astype(jnp.bfloat16)                         # (64, 128)
    fast_hb = jnp.concatenate(
        [params["cls_b"], params["bbox_b"],
         jnp.zeros((FAST_HEAD_OUT - 5 * NUM_CLASSES,), jnp.float32)]
    ).reshape(1, FAST_HEAD_OUT)

    return (bb_bands, bb_bias, rpn_bands, rpn_bias, head_bd, head_bias,
            w1, b1, fast_hw, fast_hb)


# ----------------------------------------------------------------------------
# Forward (eval path of the reference module)
# ----------------------------------------------------------------------------
@jax.jit
def _forward(params, stacked):
    N, H, W, _ = stacked.shape
    R = N * PROPOSALS_PER_IMAGE
    (bb_bands, bb_bias, rpn_bands, rpn_bias, head_bd, head_bias,
     w1, b1, fast_hw, fast_hb) = _prepare_weights(params, W)

    # image: pad y by 1 row each side, channels 3->8, flatten to (N, H+2, W*8)
    imgp = jnp.pad(stacked.astype(jnp.float32),
                   ((0, 0), (1, 1), (0, 0), (0, CIN_PAD - IN_CH)))
    imgp = imgp.reshape(N, H + 2, W * CIN_PAD).astype(jnp.bfloat16)

    # backbone + rpn (one fused Pallas kernel, grid over images)
    feat, rpn_raw = _backbone_rpn_call(imgp, bb_bands, bb_bias,
                                       rpn_bands, rpn_bias, head_bd, head_bias)

    # proposal selection: top-k + anchor decode (vmapped XLA glue)
    rpn4 = rpn_raw.reshape(N, H, W, RPN_HEAD_OUT)
    obj = rpn4[..., :NUM_ANCHORS].reshape(N, H * W * NUM_ANCHORS)
    dlt = rpn4[..., NUM_ANCHORS:5 * NUM_ANCHORS].reshape(N, H * W * NUM_ANCHORS, 4)
    anchors = make_anchors(H, W)

    def per_image(scores_n, deltas_n):
        _, top_idx = jax.lax.top_k(scores_n, PROPOSALS_PER_IMAGE)
        return decode_boxes(anchors[top_idx], deltas_n[top_idx], H, W)

    boxes = jax.vmap(per_image)(obj, dlt).reshape(R, 4)
    batch_idx = jnp.repeat(jnp.arange(N, dtype=jnp.int32), PROPOSALS_PER_IMAGE)

    # ROI gather (vectorized, lane-dense bf16) + fast-rcnn head kernel
    roi = gather_roi_features(feat, boxes, batch_idx)          # (R, 256) bf16
    head_out = _fastrcnn_head_call(roi, w1, b1, fast_hw, fast_hb)
    scores = head_out[:, :NUM_CLASSES]
    deltas = head_out[:, NUM_CLASSES:5 * NUM_CLASSES].reshape(R, NUM_CLASSES, 4)
    best_cls = jnp.argmax(scores, axis=-1)
    best_deltas = deltas[jnp.arange(R), best_cls]
    bboxes = decode_boxes(corners_to_cxcywh(boxes), best_deltas, H, W)

    zero = jnp.float32(0.0)
    return {
        "loss": zero,
        "loss_sc": zero,
        "bbox_regression_loss": zero,
        "scores": scores,
        "bboxes": bboxes,
    }


def faster_rcnn_forward(params, images):
    """images: list of (H, W, C) arrays (NHWC per image). Eval path only."""
    stacked = jnp.stack(images)
    return _forward(params, stacked)


# ----------------------------------------------------------------------------
if __name__ == "__main__":
    key = jax.random.PRNGKey(0)
    pkey, ikey = jax.random.split(key)

    params = init_params(pkey)
    img_keys = jax.random.split(ikey, 2)
    images = [jax.random.normal(k, (IMG_H, IMG_W, IN_CH), dtype=jnp.float32)
              for k in img_keys]

    out = faster_rcnn_forward(params, images)
    jax.block_until_ready(out["scores"])
    jax.block_until_ready(out["bboxes"])

    assert out["scores"].shape == (2 * PROPOSALS_PER_IMAGE, NUM_CLASSES)
    assert out["bboxes"].shape == (2 * PROPOSALS_PER_IMAGE, 4)
    print("KERNEL_OK")
</pallas_src>

<mosaic_0001>
module attributes {stable_mosaic.version = 11 : i64} {
  func.func @_backbone_rpn_kernel(%arg0: i32, %arg1: memref<1x18x128xbf16, #tpu.memory_space<vmem>>, %arg2: memref<3x128x256xbf16, #tpu.memory_space<vmem>>, %arg3: memref<1x256xf32, #tpu.memory_space<vmem>>, %arg4: memref<3x256x256xbf16, #tpu.memory_space<vmem>>, %arg5: memref<1x256xf32, #tpu.memory_space<vmem>>, %arg6: memref<256x256xbf16, #tpu.memory_space<vmem>>, %arg7: memref<1x256xf32, #tpu.memory_space<vmem>>, %arg8: memref<1x16x256xbf16, #tpu.memory_space<vmem>>, %arg9: memref<1x16x256xf32, #tpu.memory_space<vmem>>) attributes {dimension_semantics = [#tpu.dimension_semantics<parallel>], iteration_bounds = array<i64: 2>, scalar_prefetch = 0 : i64, scratch_operands = 0 : i64, tpu.core_type = #tpu.core_type<tc>, window_params = [{transform_indices = @transform_0, window_bounds = array<i64: 1, 18, 128>}, {pipeline_mode = #tpu.pipeline_mode<synchronous>, transform_indices = @transform_1, window_bounds = array<i64: 3, 128, 256>}, {pipeline_mode = #tpu.pipeline_mode<synchronous>, transform_indices = @transform_2, window_bounds = array<i64: 1, 256>}, {pipeline_mode = #tpu.pipeline_mode<synchronous>, transform_indices = @transform_3, window_bounds = array<i64: 3, 256, 256>}, {pipeline_mode = #tpu.pipeline_mode<synchronous>, transform_indices = @transform_4, window_bounds = array<i64: 1, 256>}, {pipeline_mode = #tpu.pipeline_mode<synchronous>, transform_indices = @transform_5, window_bounds = array<i64: 256, 256>}, {pipeline_mode = #tpu.pipeline_mode<synchronous>, transform_indices = @transform_6, window_bounds = array<i64: 1, 256>}, {transform_indices = @transform_7, window_bounds = array<i64: 1, 16, 256>}, {transform_indices = @transform_8, window_bounds = array<i64: 1, 16, 256>}]} {
    %cst = arith.constant 0.000000e+00 : f32
    %0 = vector.broadcast %cst : f32 to vector<16x256xf32>
    %c0 = arith.constant 0 : index
    %c0_0 = arith.constant 0 : index
    %c0_1 = arith.constant 0 : index
    %1 = vector.load %arg1[%c0, %c0_0, %c0_1] : memref<1x18x128xbf16, #tpu.memory_space<vmem>>, vector<1x16x128xbf16>
    %2 = vector.shape_cast %1 : vector<1x16x128xbf16> to vector<16x128xbf16>
    %c0_2 = arith.constant 0 : index
    %c0_3 = arith.constant 0 : index
    %c0_4 = arith.constant 0 : index
    %3 = vector.load %arg2[%c0_2, %c0_3, %c0_4] : memref<3x128x256xbf16, #tpu.memory_space<vmem>>, vector<1x128x256xbf16>
    %4 = vector.shape_cast %3 : vector<1x128x256xbf16> to vector<128x256xbf16>
    %cst_5 = arith.constant dense<0.000000e+00> : vector<16x256xf32>
    %5 = tpu.matmul %2, %4, %cst_5 {dimension_numbers = #tpu.dot_dimension_numbers<[1], [0], [0], [1], [0, 0, 1, 1], [], []>} : vector<16x128xbf16>, vector<128x256xbf16>, vector<16x256xf32> -> vector<16x256xf32>
    %6 = arith.addf %0, %5 : vector<16x256xf32>
    %c0_6 = arith.constant 0 : index
    %c1 = arith.constant 1 : index
    %c0_7 = arith.constant 0 : index
    %7 = vector.load %arg1[%c0_6, %c1, %c0_7] : memref<1x18x128xbf16, #tpu.memory_space<vmem>>, vector<1x16x128xbf16>
    %8 = vector.shape_cast %7 : vector<1x16x128xbf16> to vector<16x128xbf16>
    %c1_8 = arith.constant 1 : index
    %c0_9 = arith.constant 0 : index
    %c0_10 = arith.constant 0 : index
    %9 = vector.load %arg2[%c1_8, %c0_9, %c0_10] : memref<3x128x256xbf16, #tpu.memory_space<vmem>>, vector<1x128x256xbf16>
    %10 = vector.shape_cast %9 : vector<1x128x256xbf16> to vector<128x256xbf16>
    %cst_11 = arith.constant dense<0.000000e+00> : vector<16x256xf32>
    %11 = tpu.matmul %8, %10, %cst_11 {dimension_numbers = #tpu.dot_dimension_numbers<[1], [0], [0], [1], [0, 0, 1, 1], [], []>} : vector<16x128xbf16>, vector<128x256xbf16>, vector<16x256xf32> -> vector<16x256xf32>
    %12 = arith.addf %6, %11 : vector<16x256xf32>
    %c0_12 = arith.constant 0 : index
    %c2 = arith.constant 2 : index
    %c0_13 = arith.constant 0 : index
    %13 = vector.load %arg1[%c0_12, %c2, %c0_13] : memref<1x18x128xbf16, #tpu.memory_space<vmem>>, vector<1x16x128xbf16>
    %14 = vector.shape_cast %13 : vector<1x16x128xbf16> to vector<16x128xbf16>
    %c2_14 = arith.constant 2 : index
    %c0_15 = arith.constant 0 : index
    %c0_16 = arith.constant 0 : index
    %15 = vector.load %arg2[%c2_14, %c0_15, %c0_16] : memref<3x128x256xbf16, #tpu.memory_space<vmem>>, vector<1x128x256xbf16>
    %16 = vector.shape_cast %15 : vector<1x128x256xbf16> to vector<128x256xbf16>
    %cst_17 = arith.constant dense<0.000000e+00> : vector<16x256xf32>
    %17 = tpu.matmul %14, %16, %cst_17 {dimension_numbers = #tpu.dot_dimension_numbers<[1], [0], [0], [1], [0, 0, 1, 1], [], []>} : vector<16x128xbf16>, vector<128x256xbf16>, vector<16x256xf32> -> vector<16x256xf32>
    %18 = arith.addf %12, %17 : vector<16x256xf32>
    %c0_18 = arith.constant 0 : index
    %c0_19 = arith.constant 0 : index
    %19 = vector.load %arg3[%c0_18, %c0_19] : memref<1x256xf32, #tpu.memory_space<vmem>>, vector<1x256xf32>
    %20 = vector.broadcast %19 : vector<1x256xf32> to vector<16x256xf32>
    %21 = arith.addf %18, %20 : vector<16x256xf32>
    %cst_20 = arith.constant 0.000000e+00 : f32
    %22 = vector.broadcast %cst_20 : f32 to vector<16x256xf32>
    %23 = arith.maximumf %21, %22 : vector<16x256xf32>
    %24 = arith.truncf %23 : vector<16x256xf32> to vector<16x256xbf16>
    %c0_21 = arith.constant 0 : index
    %c0_22 = arith.constant 0 : index
    %c0_23 = arith.constant 0 : index
    %25 = vector.load %arg8[%c0_21, %c0_22, %c0_23] : memref<1x16x256xbf16, #tpu.memory_space<vmem>>, vector<1x16x256xbf16>
    %26 = vector.shape_cast %25 : vector<1x16x256xbf16> to vector<16x256xbf16>
    %27 = vector.shape_cast %24 : vector<16x256xbf16> to vector<1x16x256xbf16>
    tpu.vector_store %arg8[%c0_21, %c0_22, %c0_23], %27 {strides = array<i32>} : memref<1x16x256xbf16, #tpu.memory_space<vmem>>, vector<1x16x256xbf16>,
    %cst_24 = arith.constant 0.000000e+00 : bf16
    %28 = vector.broadcast %cst_24 : bf16 to vector<1x256xbf16>
    %29 = tpu.concatenate %28, %24, %28 in 0 : vector<1x256xbf16>, vector<16x256xbf16>, vector<1x256xbf16> -> vector<18x256xbf16>
    %cst_25 = arith.constant 0.000000e+00 : f32
    %30 = vector.broadcast %cst_25 : f32 to vector<16x256xf32>
    %31 = vector.extract_strided_slice %29 {offsets = [0, 0], sizes = [16, 256], strides = [1, 1]} : vector<18x256xbf16> to vector<16x256xbf16>
    %c0_26 = arith.constant 0 : index
    %c0_27 = arith.constant 0 : index
    %c0_28 = arith.constant 0 : index
    %32 = vector.load %arg4[%c0_26, %c0_27, %c0_28] : memref<3x256x256xbf16, #tpu.memory_space<vmem>>, vector<1x256x256xbf16>
    %33 = vector.shape_cast %32 : vector<1x256x256xbf16> to vector<256x256xbf16>
    %cst_29 = arith.constant dense<0.000000e+00> : vector<16x256xf32>
    %34 = tpu.matmul %31, %33, %cst_29 {dimension_numbers = #tpu.dot_dimension_numbers<[1], [0], [0], [1], [0, 0, 1, 1], [], []>} : vector<16x256xbf16>, vector<256x256xbf16>, vector<16x256xf32> -> vector<16x256xf32>
    %35 = arith.addf %30, %34 : vector<16x256xf32>
    %36 = vector.extract_strided_slice %29 {offsets = [1, 0], sizes = [16, 256], strides = [1, 1]} : vector<18x256xbf16> to vector<16x256xbf16>
    %c1_30 = arith.constant 1 : index
    %c0_31 = arith.constant 0 : index
    %c0_32 = arith.constant 0 : index
    %37 = vector.load %arg4[%c1_30, %c0_31, %c0_32] : memref<3x256x256xbf16, #tpu.memory_space<vmem>>, vector<1x256x256xbf16>
    %38 = vector.shape_cast %37 : vector<1x256x256xbf16> to vector<256x256xbf16>
    %cst_33 = arith.constant dense<0.000000e+00> : vector<16x256xf32>
    %39 = tpu.matmul %36, %38, %cst_33 {dimension_numbers = #tpu.dot_dimension_numbers<[1], [0], [0], [1], [0, 0, 1, 1], [], []>} : vector<16x256xbf16>, vector<256x256xbf16>, vector<16x256xf32> -> vector<16x256xf32>
    %40 = arith.addf %35, %39 : vector<16x256xf32>
    %41 = vector.extract_strided_slice %29 {offsets = [2, 0], sizes = [16, 256], strides = [1, 1]} : vector<18x256xbf16> to vector<16x256xbf16>
    %c2_34 = arith.constant 2 : index
    %c0_35 = arith.constant 0 : index
    %c0_36 = arith.constant 0 : index
    %42 = vector.load %arg4[%c2_34, %c0_35, %c0_36] : memref<3x256x256xbf16, #tpu.memory_space<vmem>>, vector<1x256x256xbf16>
    %43 = vector.shape_cast %42 : vector<1x256x256xbf16> to vector<256x256xbf16>
    %cst_37 = arith.constant dense<0.000000e+00> : vector<16x256xf32>
    %44 = tpu.matmul %41, %43, %cst_37 {dimension_numbers = #tpu.dot_dimension_numbers<[1], [0], [0], [1], [0, 0, 1, 1], [], []>} : vector<16x256xbf16>, vector<256x256xbf16>, vector<16x256xf32> -> vector<16x256xf32>
    %45 = arith.addf %40, %44 : vector<16x256xf32>
    %c0_38 = arith.constant 0 : index
    %c0_39 = arith.constant 0 : index
    %46 = vector.load %arg5[%c0_38, %c0_39] : memref<1x256xf32, #tpu.memory_space<vmem>>, vector<1x256xf32>
    %47 = vector.broadcast %46 : vector<1x256xf32> to vector<16x256xf32>
    %48 = arith.addf %45, %47 : vector<16x256xf32>
    %cst_40 = arith.constant 0.000000e+00 : f32
    %49 = vector.broadcast %cst_40 : f32 to vector<16x256xf32>
    %50 = arith.maximumf %48, %49 : vector<16x256xf32>
    %51 = arith.truncf %50 : vector<16x256xf32> to vector<16x256xbf16>
    %c0_41 = arith.constant 0 : index
    %c0_42 = arith.constant 0 : index
    %52 = vector.load %arg6[%c0_41, %c0_42] : memref<256x256xbf16, #tpu.memory_space<vmem>>, vector<256x256xbf16>
    %cst_43 = arith.constant dense<0.000000e+00> : vector<16x256xf32>
    %53 = tpu.matmul %51, %52, %cst_43 {dimension_numbers = #tpu.dot_dimension_numbers<[1], [0], [0], [1], [0, 0, 1, 1], [], []>} : vector<16x256xbf16>, vector<256x256xbf16>, vector<16x256xf32> -> vector<16x256xf32>
    %c0_44 = arith.constant 0 : index
    %c0_45 = arith.constant 0 : index
    %54 = vector.load %arg7[%c0_44, %c0_45] : memref<1x256xf32, #tpu.memory_space<vmem>>, vector<1x256xf32>
    %55 = vector.broadcast %54 : vector<1x256xf32> to vector<16x256xf32>
    %56 = arith.addf %53, %55 : vector<16x256xf32>
    %57 = tpu.iota {dimensions = array<i32: 1>} : vector<16x256xi32>
    %c15_i32 = arith.constant 15 : i32
    %58 = vector.broadcast %c15_i32 : i32 to vector<16x256xi32>
    %59 = arith.andi %57, %58 : vector<16x256xi32>
    %c3_i32 = arith.constant 3 : i32
    %60 = vector.broadcast %c3_i32 : i32 to vector<16x256xi32>
    %61 = arith.cmpi slt, %59, %60 : vector<16x256xi32>
    %cst_46 = arith.constant 0.000000e+00 : f32
    %62 = vector.broadcast %cst_46 : f32 to vector<16x256xf32>
    %63 = arith.select %61, %56, %62 : vector<16x256xi1>, vector<16x256xf32>
    %cst_47 = arith.constant 0.000000e+00 : f32
    %64 = vector.broadcast %cst_47 : f32 to vector<16x256xf32>
    %65 = arith.subf %64, %63 : vector<16x256xf32>
    %66 = math.exp %65 : vector<16x256xf32>
    %cst_48 = arith.constant 1.000000e+00 : f32
    %67 = vector.broadcast %cst_48 : f32 to vector<16x256xf32>
    %68 = arith.addf %67, %66 : vector<16x256xf32>
    %69 = tpu.reciprocal %68 {approx = true} : vector<16x256xf32> -> vector<16x256xf32>
    %70 = arith.select %61, %69, %56 : vector<16x256xi1>, vector<16x256xf32>
    %c0_49 = arith.constant 0 : index
    %c0_50 = arith.constant 0 : index
    %c0_51 = arith.constant 0 : index
    %71 = vector.load %arg9[%c0_49, %c0_50, %c0_51] : memref<1x16x256xf32, #tpu.memory_space<vmem>>, vector<1x16x256xf32>
    %72 = vector.shape_cast %71 : vector<1x16x256xf32> to vector<16x256xf32>
    %73 = vector.shape_cast %70 : vector<16x256xf32> to vector<1x16x256xf32>
    tpu.vector_store %arg9[%c0_49, %c0_50, %c0_51], %73 {strides = array<i32>} : memref<1x16x256xf32, #tpu.memory_space<vmem>>, vector<1x16x256xf32>,
    return
  }
  func.func @transform_0(%arg0: i32) -> (i32, i32, i32) {
    %c0_i32 = arith.constant 0 : i32
    %c0_i32_0 = arith.constant 0 : i32
    %c0_i32_1 = arith.constant 0 : i32
    return %arg0, %c0_i32, %c0_i32_0 : i32, i32, i32
  }
  func.func @transform_1(%arg0: i32) -> (i32, i32, i32) {
    %c0_i32 = arith.constant 0 : i32
    %c0_i32_0 = arith.constant 0 : i32
    %c0_i32_1 = arith.constant 0 : i32
    %c0_i32_2 = arith.constant 0 : i32
    return %c0_i32, %c0_i32_0, %c0_i32_1 : i32, i32, i32
  }
  func.func @transform_2(%arg0: i32) -> (i32, i32) {
    %c0_i32 = arith.constant 0 : i32
    %c0_i32_0 = arith.constant 0 : i32
    %c0_i32_1 = arith.constant 0 : i32
    return %c0_i32, %c0_i32_0 : i32, i32
  }
  func.func @transform_3(%arg0: i32) -> (i32, i32, i32) {
    %c0_i32 = arith.constant 0 : i32
    %c0_i32_0 = arith.constant 0 : i32
    %c0_i32_1 = arith.constant 0 : i32
    %c0_i32_2 = arith.constant 0 : i32
    return %c0_i32, %c0_i32_0, %c0_i32_1 : i32, i32, i32
  }
  func.func @transform_4(%arg0: i32) -> (i32, i32) {
    %c0_i32 = arith.constant 0 : i32
    %c0_i32_0 = arith.constant 0 : i32
    %c0_i32_1 = arith.constant 0 : i32
    return %c0_i32, %c0_i32_0 : i32, i32
  }
  func.func @transform_5(%arg0: i32) -> (i32, i32) {
    %c0_i32 = arith.constant 0 : i32
    %c0_i32_0 = arith.constant 0 : i32
    %c0_i32_1 = arith.constant 0 : i32
    return %c0_i32, %c0_i32_0 : i32, i32
  }
  func.func @transform_6(%arg0: i32) -> (i32, i32) {
    %c0_i32 = arith.constant 0 : i32
    %c0_i32_0 = arith.constant 0 : i32
    %c0_i32_1 = arith.constant 0 : i32
    return %c0_i32, %c0_i32_0 : i32, i32
  }
  func.func @transform_7(%arg0: i32) -> (i32, i32, i32) {
    %c0_i32 = arith.constant 0 : i32
    %c0_i32_0 = arith.constant 0 : i32
    %c0_i32_1 = arith.constant 0 : i32
    return %arg0, %c0_i32, %c0_i32_0 : i32, i32, i32
  }
  func.func @transform_8(%arg0: i32) -> (i32, i32, i32) {
    %c0_i32 = arith.constant 0 : i32
    %c0_i32_0 = arith.constant 0 : i32
    %c0_i32_1 = arith.constant 0 : i32
    return %arg0, %c0_i32, %c0_i32_0 : i32, i32, i32
  }
}

module attributes {stable_mosaic.version = 11 : i64} {
  func.func @_fastrcnn_head_kernel(%arg0: memref<16x256xbf16, #tpu.memory_space<vmem>>, %arg1: memref<256x64xbf16, #tpu.memory_space<vmem>>, %arg2: memref<1x64xf32, #tpu.memory_space<vmem>>, %arg3: memref<64x128xbf16, #tpu.memory_space<vmem>>, %arg4: memref<1x128xf32, #tpu.memory_space<vmem>>, %arg5: memref<16x128xf32, #tpu.memory_space<vmem>>) attributes {dimension_semantics = [], scalar_prefetch = 0 : i64, scratch_operands = 0 : i64, tpu.core_type = #tpu.core_type<tc>} {
    %c0 = arith.constant 0 : index
    %c0_0 = arith.constant 0 : index
    %0 = vector.load %arg0[%c0, %c0_0] : memref<16x256xbf16, #tpu.memory_space<vmem>>, vector<16x256xbf16>
    %c0_1 = arith.constant 0 : index
    %c0_2 = arith.constant 0 : index
    %1 = vector.load %arg1[%c0_1, %c0_2] : memref<256x64xbf16, #tpu.memory_space<vmem>>, vector<256x64xbf16>
    %cst = arith.constant dense<0.000000e+00> : vector<16x64xf32>
    %2 = tpu.matmul %0, %1, %cst {dimension_numbers = #tpu.dot_dimension_numbers<[1], [0], [0], [1], [0, 0, 1, 1], [], []>} : vector<16x256xbf16>, vector<256x64xbf16>, vector<16x64xf32> -> vector<16x64xf32>
    %c0_3 = arith.constant 0 : index
    %c0_4 = arith.constant 0 : index
    %3 = vector.load %arg2[%c0_3, %c0_4] : memref<1x64xf32, #tpu.memory_space<vmem>>, vector<1x64xf32>
    %4 = vector.broadcast %3 : vector<1x64xf32> to vector<16x64xf32>
    %5 = arith.addf %2, %4 : vector<16x64xf32>
    %cst_5 = arith.constant 0.000000e+00 : f32
    %6 = vector.broadcast %cst_5 : f32 to vector<16x64xf32>
    %7 = arith.maximumf %5, %6 : vector<16x64xf32>
    %8 = arith.truncf %7 : vector<16x64xf32> to vector<16x64xbf16>
    %c0_6 = arith.constant 0 : index
    %c0_7 = arith.constant 0 : index
    %9 = vector.load %arg3[%c0_6, %c0_7] : memref<64x128xbf16, #tpu.memory_space<vmem>>, vector<64x128xbf16>
    %cst_8 = arith.constant dense<0.000000e+00> : vector<16x128xf32>
    %10 = tpu.matmul %8, %9, %cst_8 {dimension_numbers = #tpu.dot_dimension_numbers<[1], [0], [0], [1], [0, 0, 1, 1], [], []>} : vector<16x64xbf16>, vector<64x128xbf16>, vector<16x128xf32> -> vector<16x128xf32>
    %c0_9 = arith.constant 0 : index
    %c0_10 = arith.constant 0 : index
    %11 = vector.load %arg4[%c0_9, %c0_10] : memref<1x128xf32, #tpu.memory_space<vmem>>, vector<1x128xf32>
    %12 = vector.broadcast %11 : vector<1x128xf32> to vector<16x128xf32>
    %13 = arith.addf %10, %12 : vector<16x128xf32>
    %14 = tpu.iota {dimensions = array<i32: 1>} : vector<16x128xi32>
    %c5_i32 = arith.constant 5 : i32
    %15 = vector.broadcast %c5_i32 : i32 to vector<16x128xi32>
    %16 = arith.cmpi slt, %14, %15 : vector<16x128xi32>
    %cst_11 = arith.constant -1.000000e+30 : f32
    %17 = vector.broadcast %cst_11 : f32 to vector<16x128xf32>
    %18 = arith.select %16, %13, %17 : vector<16x128xi1>, vector<16x128xf32>
    %cst_12 = arith.constant dense<0xFF800000> : vector<16xf32>
    %19 = vector.multi_reduction <maximumf>, %18, %cst_12 [1] : vector<16x128xf32> to vector<16xf32>
    %20 = vector.shape_cast %19 : vector<16xf32> to vector<16x1xf32>
    %21 = vector.broadcast %20 : vector<16x1xf32> to vector<16x128xf32>
    %22 = arith.subf %13, %21 : vector<16x128xf32>
    %cst_13 = arith.constant 0.000000e+00 : f32
    %23 = vector.broadcast %cst_13 : f32 to vector<16x128xf32>
    %24 = arith.select %16, %22, %23 : vector<16x128xi1>, vector<16x128xf32>
    %25 = math.exp %24 : vector<16x128xf32>
    %cst_14 = arith.constant 0.000000e+00 : f32
    %26 = vector.broadcast %cst_14 : f32 to vector<16x128xf32>
    %27 = arith.select %16, %25, %26 : vector<16x128xi1>, vector<16x128xf32>
    %cst_15 = arith.constant dense<0.000000e+00> : vector<16xf32>
    %28 = vector.multi_reduction <add>, %27, %cst_15 [1] : vector<16x128xf32> to vector<16xf32>
    %29 = vector.shape_cast %28 : vector<16xf32> to vector<16x1xf32>
    %30 = tpu.reciprocal %29 {approx = true} : vector<16x1xf32> -> vector<16x1xf32>
    %31 = vector.broadcast %30 : vector<16x1xf32> to vector<16x128xf32>
    %32 = arith.mulf %27, %31 : vector<16x128xf32>
    %33 = arith.select %16, %32, %13 : vector<16x128xi1>, vector<16x128xf32>
    %c0_16 = arith.constant 0 : index
    %c0_17 = arith.constant 0 : index
    %34 = vector.load %arg5[%c0_16, %c0_17] : memref<16x128xf32, #tpu.memory_space<vmem>>, vector<16x128xf32>
    tpu.vector_store %arg5[%c0_16, %c0_17], %33 {strides = array<i32>} : memref<16x128xf32, #tpu.memory_space<vmem>>, vector<16x128xf32>,
    return
  }
}

</mosaic_0001>

<bundles_post_ra>
// kernel: tile.33
= control target key start
LH: loop header
LB: loop body
LE: loop exit
PB: predicated region body
PF: predicated region fallthrough
CT: control target
= control target key end

     0   :  { %s28_s0 = inlined_call_operand.vmem [shape: f32[16], index: 0, kind: input, shape index: {}]   ;;  %s29_s1 = inlined_call_operand.vmem [shape: f32[16,16], index: 1, kind: output, shape index: {}]  }
   0x1   :  { %v4_v0 = vld [vmem:[%s28_s0] ss:$0 sm:$0xff] }
   0x2   :  { %5 = vst [vmem:[%s29_s1] sm:$0xff] %v4_v0  ;;  %8 = vst [vmem:[%s29_s1 + $0x8] sm:$0xff] %v4_v0 }

// kernel: tile.34
= control target key start
LH: loop header
LB: loop body
LE: loop exit
PB: predicated region body
PF: predicated region fallthrough
CT: control target
= control target key end

     0   :  { %s7_s6 = smov 3  ;;  %s21_s9 = smov 3  ;;  %vm4_vm0 = vcmask 130048   ;;  %vm11_vm1 = vcmask 1048448   ;;  %vm18_vm2 = vcmask 917248   ;;  %vm25_vm3 = vcmask 786048   ;;  %s128_s0 = inlined_call_operand.vmem [shape: f32[16,16], index: 0, kind: input, shape index: {}]   ;;  %s129_s1 = inlined_call_operand.vmem [shape: f32[1,256], index: 1, kind: output, shape index: {}]  }
   0x1   :  { %v66_v0 = vld [vmem:[%s128_s0 + $0x7] ss:$8 sm:%s7_s6]   ;;  %s81_s10 = smov 112   ;;  %v68_v1 = vld [vmem:[%s128_s0 + $0x5] ss:$8 sm:%s21_s9]   ;;  %s14_s13 = smov 3 }
   0x2   :  { %9 = vrot.lane.b32.xlu0 %v66_v0, %s81_s10  ;;  %s82_s14 = smov 80   ;;  %v67_v2 = vld [vmem:[%s128_s0 + $0x6] ss:$8 sm:%s14_s13]   ;;  %s28_s17 = smov 3  ;;  %vm32_vm4 = vcmask 654848   ;;  %vm39_vm5 = vcmask 523648  }
   0x3   :  { %23 = vrot.lane.b32.xlu1 %v68_v1, %s82_s14  ;;  %v69_v3 = vld [vmem:[%s128_s0 + $0x4] ss:$8 sm:%s28_s17]   ;;  %s35_s20 = smov 3  ;;  %s42_s21 = smov 3  ;;  %vm46_vm6 = vcmask 392448   ;;  %vm53_vm7 = vcmask 261248  }
   0x4   :  { %s83_s22 = smov 96   ;;  %s84_s23 = smov 64   ;;  %v70_v4 = vld [vmem:[%s128_s0 + $0x3] ss:$8 sm:%s35_s20]   ;;  %v71_v5 = vld [vmem:[%s128_s0 + $0x2] ss:$8 sm:%s42_s21]  }
   0x5   :  { %s2_s26 = smov 3  ;;  %s49_s29 = smov 3 }
   0x6   :  { %16 = vrot.lane.b32.xlu0 %v67_v2, %s83_s22  ;;  %v3_v6 = vld [vmem:[%s128_s0] ss:$8 sm:%s2_s26]   ;;  %s85_s3 = smov 48   ;;  %s86_s4 = smov 32  }
   0x7   :  { %30 = vrot.lane.b32.xlu1 %v69_v3, %s84_s23  ;;  %5 = vst.msk [vmem:[#allocation0] ss:$8 sm:$0x3] %vm4_vm0, %v3_v6   ;;  %v72_v7 = vld [vmem:[%s128_s0 + $0x1] ss:$8 sm:%s49_s29]   ;;  %s87_s0 = smov 16  }
   0xa   :  { %37 = vrot.lane.b32.xlu0 %v70_v4, %s85_s3 }
   0xb   :  { %44 = vrot.lane.b32.xlu1 %v71_v5, %s86_s4 }
   0xe   :  { %51 = vrot.lane.b32.xlu0 %v72_v7, %s87_s0 }
  0x74   :  { %v10_v8 = vpop.permute.xlu0 %9  }
  0x75   :  { %12 = vst.msk [vmem:[#allocation0] ss:$8 sm:$0x3] %vm11_vm1, %v10_v8   ;;  %v24_v9 = vpop.permute.xlu1 %23  }
  0x78   :  { %v17_v10 = vpop.permute.xlu0 %16  }
  0x79   :  { %19 = vst.msk [vmem:[#allocation0] ss:$8 sm:$0x3] %vm18_vm2, %v17_v10   ;;  %v31_v11 = vpop.permute.xlu1 %30  }
  0x7a   :  { %26 = vst.msk [vmem:[#allocation0] ss:$8 sm:$0x3] %vm25_vm3, %v24_v9  }
  0x7b   :  { %33 = vst.msk [vmem:[#allocation0] ss:$8 sm:$0x3] %vm32_vm4, %v31_v11  }
  0x7c   :  { %v38_v12 = vpop.permute.xlu0 %37  }
  0x7d   :  { %40 = vst.msk [vmem:[#allocation0] ss:$8 sm:$0x3] %vm39_vm5, %v38_v12   ;;  %v45_v13 = vpop.permute.xlu1 %44  }
  0x7e   :  { %47 = vst.msk [vmem:[#allocation0] ss:$8 sm:$0x3] %vm46_vm6, %v45_v13  }
  0x80   :  { %v52_v14 = vpop.permute.xlu0 %51  }
  0x81   :  { %54 = vst.msk [vmem:[#allocation0] ss:$8 sm:$0x3] %vm53_vm7, %v52_v14  }
  0x88   :  { %v58_v15 = vld [vmem:[#allocation0] sm:$0x1]  ;;  %v62_v16 = vld [vmem:[#allocation0 + $0x8] sm:$0x1] }
  0x89   :  { %60 = vst [vmem:[%s129_s1] sm:$0x1] %v58_v15  ;;  %73 = vst [vmem:[%s129_s1 + $0x1] sm:$0x1] %v62_v16 }

// kernel: _forward.2
= control target key start
LH: loop header
LB: loop body
LE: loop exit
PB: predicated region body
PF: predicated region fallthrough
CT: control target
= control target key end

     0   :  { %s2638_s27 = smov 0   ;;  %s3272_s0 = inlined_call_operand.vmem [shape: bf16[2,18,128], index: 0, kind: input, shape index: {}]   ;;  %s3273_s1 = inlined_call_operand.vmem [shape: bf16[3,128,256], index: 1, kind: input, shape index: {}]   ;;  %s3274_s2 = inlined_call_operand.vmem [shape: f32[1,256], index: 2, kind: input, shape index: {}]   ;;  %s3275_s3 = inlined_call_operand.vmem [shape: bf16[3,256,256], index: 3, kind: input, shape index: {}]   ;;  %s3276_s4 = inlined_call_operand.vmem [shape: f32[1,256], index: 4, kind: input, shape index: {}]   ;;  %s3277_s5 = inlined_call_operand.vmem [shape: bf16[256,256], index: 5, kind: input, shape index: {}]   ;;  %s3278_s6 = inlined_call_operand.vmem [shape: f32[1,256], index: 6, kind: input, shape index: {}]   ;;  %s3279_s7 = inlined_call_operand.vmem [shape: bf16[2,16,256], index: 7, kind: output, shape index: {0}]   ;;  %s3280_s8 = inlined_call_operand.vmem [shape: f32[2,16,256], index: 8, kind: output, shape index: {1}]  }
   0x1 LB: > { %s1982_s28 = sadd.s32 4294967295, %s2590_s27   ;;  %p1986_p0 = scmp.ge.s32.totalorder %s2590_s27, 1  ;;  %s2590_s27 = sphi %s2638_s27, %s19_s27  }
   0x2   : > { %p265_p1 = scmp.lt.s32.totalorder %s2590_s27, 3 }
   0x4   : > { %p266_p2 = pnand %p1986_p0, %p265_p1 }
   0x5   : > { %v2301_v0 = vld [vmem:[%s3273_s1 + $0x84] ss:$8 sps:$4 sm:$0xff] (!%p266_p2)   ;;  %p304_p3 = scmp.lt.s32.totalorder (!%p266_p2), %s1982_s28, 1  ;;  %v2303_v1 = vld [vmem:[%s3273_s1 + $0x80] ss:$8 sps:$4 sm:$0xff] (!%p266_p2)   ;;  %v2592_v2 = vmov (!%p266_p2), 0  }
   0x6   : > { %269 = sbr.rel (%p266_p2) target bundleno = 936 (0x3a8), region = 48  ;;  %490 = vmatprep.mubr.bf16.mxu0 (!%p266_p2), %v2592_v2  ;;  %458 = vmatprep.subr.bf16.mxu0 (!%p266_p2), %v2301_v0  ;;  %v2304_v3 = vld [vmem:[%s3273_s1 + $0x94] ss:$8 sps:$4 sm:$0xff] (!%p266_p2)   ;;  %v2306_v4 = vld [vmem:[%s3273_s1 + $0x90] ss:$8 sps:$4 sm:$0xff] (!%p266_p2)   ;;  %vm646_vm1 = vcmask (!%p266_p2), 1046528  }
   0x7   : > { %459 = vmatpush1.bf16.msra.mxu0 (!%p266_p2), %v2303_v1  ;;  %v2307_v5 = vld [vmem:[%s3273_s1 + $0xa4] ss:$8 sps:$4 sm:$0xff] (!%p266_p2)   ;;  %v2309_v6 = vld [vmem:[%s3273_s1 + $0xa0] ss:$8 sps:$4 sm:$0xff] (!%p266_p2)   ;;  %v2310_v7 = vld [vmem:[%s3273_s1 + $0xb4] ss:$8 sps:$4 sm:$0xff] (!%p266_p2)  }
   0x8   : > { %460 = vmatprep.subr.bf16.mxu0 (!%p266_p2), %v2304_v3  ;;  %v2312_v8 = vld [vmem:[%s3273_s1 + $0xb0] ss:$8 sps:$4 sm:$0xff] (!%p266_p2)   ;;  %v2313_v9 = vld [vmem:[%s3273_s1 + $0xc4] ss:$8 sps:$4 sm:$0xff] (!%p266_p2)   ;;  %v2315_v12 = vld [vmem:[%s3273_s1 + $0xc0] ss:$8 sps:$4 sm:$0xff] (!%p266_p2)  }
   0x9   : > { %v2316_v14 = vld [vmem:[%s3273_s1 + $0xd4] ss:$8 sps:$4 sm:$0xff] (!%p266_p2)   ;;  %v2318_v15 = vld [vmem:[%s3273_s1 + $0xd0] ss:$8 sps:$4 sm:$0xff] (!%p266_p2)   ;;  %v2319_v18 = vld [vmem:[%s3273_s1 + $0xe4] ss:$8 sps:$4 sm:$0xff] (!%p266_p2)  }
   0xa   : > { %v2321_v19 = vld [vmem:[%s3273_s1 + $0xe0] ss:$8 sps:$4 sm:$0xff] (!%p266_p2)   ;;  %v2322_v23 = vld [vmem:[%s3273_s1 + $0xf4] ss:$8 sps:$4 sm:$0xff] (!%p266_p2)   ;;  %v2324_v24 = vld [vmem:[%s3273_s1 + $0xf0] ss:$8 sps:$4 sm:$0xff] (!%p266_p2)  }
   0xb   : > { %461 = vmatpush1.bf16.msra.mxu0 (!%p266_p2), %v2306_v4  ;;  %v2327_v27 = vld [vmem:[%s3273_s1 + $0x4] ss:$8 sps:$4 sm:$0xff] (!%p266_p2)   ;;  %vm364_vm0 = vsmask.f32 (!%p266_p2), 7424  ;;  %v2325_v28 = vld [vmem:[%s3273_s1] ss:$8 sps:$4 sm:$0xff] (!%p266_p2)  }
   0xc   : > { %462 = vmatprep.subr.bf16.mxu0 (!%p266_p2), %v2307_v5  ;;  %v2332_v30 = vld [vmem:[%s3273_s1 + $0x14] ss:$8 sps:$4 sm:$0xff] (!%p266_p2)   ;;  %v2330_v31 = vld [vmem:[%s3273_s1 + $0x10] ss:$8 sps:$4 sm:$0xff] (!%p266_p2)   ;;  %v2376_v35 = vld [vmem:[%s3275_s3 + $0x104] ss:$8 sps:$4 sm:$0xff] (!%p266_p2)  }
   0xd   : > { %s3286_s28 = smov (!%p304_p3, %s1982_s28), 1  ;;  %v2378_v36 = vld [vmem:[%s3275_s3 + $0x100] ss:$8 sps:$4 sm:$0xff]   ;;  %v2335_v37 = vld [vmem:[%s3273_s1 + $0x24] ss:$8 sps:$4 sm:$0xff]   ;;  %1088 = vmatprep.subr.bf16.mxu1 %v2376_v35  ;;  %vm830_vm2 = vcmask 1040384  }
   0xe   : > { %s2291_s17 = smul.u32 12, %s3286_s28  ;;  %v2379_v38 = vld [vmem:[%s3275_s3 + $0x114] ss:$8 sps:$4 sm:$0xff]   ;;  %1089 = vmatpush1.bf16.msra.mxu1 %v2378_v36  ;;  %v2381_v40 = vld [vmem:[%s3275_s3 + $0x110] ss:$8 sps:$4 sm:$0xff]   ;;  %s2271_s16 = sshll.u32 %s3286_s28, 4 }
   0xf   : > { %463 = vmatpush1.bf16.msra.mxu0 %v2309_v6  ;;  %v2333_v41 = vld [vmem:[%s3273_s1 + $0x20] ss:$8 sps:$4 sm:$0xff]   ;;  %1090 = vmatprep.subr.bf16.mxu1 %v2379_v38  ;;  %v2382_v43 = vld [vmem:[%s3275_s3 + $0x124] ss:$8 sps:$4 sm:$0xff]   ;;  %v2338_v44 = vld [vmem:[%s3273_s1 + $0x34] ss:$8 sps:$4 sm:$0xff]   ;;  %s313_s18 = scalar_lea.vmem %s3279_s7, %s2271_s16 }
  0x10   : > { %s2674_s24 = scalar_lea.vmem %s3272_s0, %s2291_s17  ;;  %464 = vmatprep.subr.bf16.mxu0 %v2310_v7  ;;  %v2384_v45 = vld [vmem:[%s3275_s3 + $0x120] ss:$8 sps:$4 sm:$0xff]   ;;  %v2336_v46 = vld [vmem:[%s3273_s1 + $0x30] ss:$8 sps:$4 sm:$0xff]   ;;  %v2385_v47 = vld [vmem:[%s3275_s3 + $0x134] ss:$8 sps:$4 sm:$0xff]  }
  0x11   : > { %v320_v10 = vld [vmem:[%s2674_s24] sm:$0xf]  ;;  %v321_v11 = vld [vmem:[%s2674_s24 + $0x4] sm:$0xf]  ;;  %v2387_v50 = vld [vmem:[%s3275_s3 + $0x130] ss:$8 sps:$4 sm:$0xff]  }
  0x12   : > { %v2687_v13 = vcombine.low %v320_v10, %v321_v11  ;;  %v2329_v16 = vld [vmem:[%s2674_s24 + $0x8] ss:$0 sps:$4 sm:$0x11]   ;;  %v625_v32 = vld [vmem:[%s2674_s24] sm:$0xe]  ;;  %1091 = vmatpush1.bf16.msra.mxu1 %v2381_v40  ;;  %s2272_s14 = sshll.u32 %s3286_s28, 5 }
  0x13   : > { %465 = vmatpush1.bf16.msra.mxu0 %v2312_v8  ;;  %v373_v22 = vshll.u32 %v2329_v16, 16  ;;  %v2058_v33 = vcombine.low %v625_v32, %v321_v11  ;;  %v648_v34 = vrot.slane %v2329_v16, 1  ;;  %1092 = vmatprep.subr.bf16.mxu1 %v2382_v43  ;;  %v2341_v48 = vld [vmem:[%s3273_s1 + $0x44] ss:$8 sps:$4 sm:$0xff]   ;;  %v2339_v49 = vld [vmem:[%s3273_s1 + $0x40] ss:$8 sps:$4 sm:$0xff]   ;;  %s318_s17 = scalar_lea.vmem %s3280_s8, %s2272_s14 }
  0x14   : > { %466 = vmatprep.subr.bf16.mxu0 %v2313_v9  ;;  %v368_v17 = vshll.u32 %v2687_v13, 16  ;;  %v366_v20 = vshrl.u32 %v2687_v13, 16  ;;  %v2344_v51 = vld [vmem:[%s3273_s1 + $0x54] ss:$8 sps:$4 sm:$0xff]   ;;  %v2388_v52 = vld [vmem:[%s3275_s3 + $0x144] ss:$8 sps:$4 sm:$0xff]  }
  0x15   : > { %v375_v26 = vrot.slane %v373_v22, 1  ;;  %v647_v39 = vrot.slane %v2058_v33, 1  ;;  %v2390_v53 = vld [vmem:[%s3275_s3 + $0x140] ss:$8 sps:$4 sm:$0xff]   ;;  %v2342_v54 = vld [vmem:[%s3273_s1 + $0x50] ss:$8 sps:$4 sm:$0xff]  }
  0x16   : > { %v370_v21 = vrot.slane %v368_v17, 1  ;;  %1093 = vmatpush1.bf16.msra.mxu1 %v2384_v45  ;;  %v2391_v55 = vld [vmem:[%s3275_s3 + $0x154] ss:$8 sps:$4 sm:$0xff]   ;;  %v2347_v56 = vld [vmem:[%s3273_s1 + $0x64] ss:$8 sps:$4 sm:$0xff]  }
  0x17   : > { %467 = vmatpush1.bf16.msra.mxu0 %v2315_v12  ;;  %v2744_v42 = vsel %vm646_vm1, %v647_v39, %v648_v34  ;;  %1094 = vmatprep.subr.bf16.mxu1 %v2385_v47  ;;  %v2393_v57 = vld [vmem:[%s3275_s3 + $0x150] ss:$8 sps:$4 sm:$0xff]   ;;  %v2345_v58 = vld [vmem:[%s3273_s1 + $0x60] ss:$8 sps:$4 sm:$0xff]   ;;  %v2394_v59 = vld [vmem:[%s3275_s3 + $0x164] ss:$8 sps:$4 sm:$0xff]   ;;  %v780_v34 = vlaneseq }
  0x18   : > { %468 = vmatprep.subr.bf16.mxu0 %v2316_v14  ;;  %v371_v25 = vor.u32 %v370_v21, %v366_v20  ;;  %v2350_v60 = vld [vmem:[%s3273_s1 + $0x74] ss:$8 sps:$4 sm:$0xff]   ;;  %v2396_v61 = vld [vmem:[%s3275_s3 + $0x160] ss:$8 sps:$4 sm:$0xff]   ;;  %v2348_v62 = vld [vmem:[%s3273_s1 + $0x70] ss:$8 sps:$4 sm:$0xff]  }
  0x19   : > { %v2397_v63 = vld [vmem:[%s3275_s3 + $0x174] ss:$8 sps:$4 sm:$0xff]   ;;  %v2353_v0 = vld [vmem:[%s3273_s1 + $0x104] ss:$8 sps:$4 sm:$0xff]   ;;  %v2399_v1 = vld [vmem:[%s3275_s3 + $0x170] ss:$8 sps:$4 sm:$0xff]  }
  0x1a   : > { %v376_v29 = vsel %vm364_vm0, %v371_v25, %v375_v26  ;;  %1095 = vmatpush1.bf16.msra.mxu1 %v2387_v50  ;;  %v2351_v3 = vld [vmem:[%s3273_s1 + $0x100] ss:$8 sps:$4 sm:$0xff]   ;;  %v2356_v4 = vld [vmem:[%s3273_s1 + $0x114] ss:$8 sps:$4 sm:$0xff]   ;;  %v2400_v5 = vld [vmem:[%s3275_s3 + $0x184] ss:$8 sps:$4 sm:$0xff]  }
  0x1b   : > { %469 = vmatpush1.bf16.msra.mxu0 %v2318_v15  ;;  %1096 = vmatprep.subr.bf16.mxu1 %v2388_v52  ;;  %v2402_v6 = vld [vmem:[%s3275_s3 + $0x180] ss:$8 sps:$4 sm:$0xff]   ;;  %v2354_v7 = vld [vmem:[%s3273_s1 + $0x110] ss:$8 sps:$4 sm:$0xff]   ;;  %v2403_v8 = vld [vmem:[%s3275_s3 + $0x194] ss:$8 sps:$4 sm:$0xff]  }
  0x1c   : > { %470 = vmatprep.subr.bf16.mxu0 %v2319_v18  ;;  %v2359_v9 = vld [vmem:[%s3273_s1 + $0x124] ss:$8 sps:$4 sm:$0xff]   ;;  %v2405_v10 = vld [vmem:[%s3275_s3 + $0x190] ss:$8 sps:$4 sm:$0xff]   ;;  %v2357_v11 = vld [vmem:[%s3273_s1 + $0x120] ss:$8 sps:$4 sm:$0xff]  }
  0x1d   : > { %v2362_v12 = vld [vmem:[%s3273_s1 + $0x134] ss:$8 sps:$4 sm:$0xff]   ;;  %v2363_v14 = vld [vmem:[%s3273_s1 + $0x140] ss:$8 sps:$4 sm:$0xff]   ;;  %v2366_v16 = vld [vmem:[%s3273_s1 + $0x150] ss:$8 sps:$4 sm:$0xff]  }
  0x1e   : > { %1097 = vmatpush1.bf16.msra.mxu1 %v2390_v53  ;;  %v2368_v15 = vld [vmem:[%s3273_s1 + $0x154] ss:$8 sps:$4 sm:$0xff]   ;;  %v2371_v17 = vld [vmem:[%s3273_s1 + $0x164] ss:$8 sps:$4 sm:$0xff]   ;;  %v2369_v18 = vld [vmem:[%s3273_s1 + $0x160] ss:$8 sps:$4 sm:$0xff]  }
  0x1f   : > { %471 = vmatpush1.bf16.msra.mxu0 %v2321_v19  ;;  %1098 = vmatprep.subr.bf16.mxu1 %v2391_v55  ;;  %v2374_v19 = vld [vmem:[%s3273_s1 + $0x174] ss:$8 sps:$4 sm:$0xff]   ;;  %v2372_v20 = vld [vmem:[%s3273_s1 + $0x170] ss:$8 sps:$4 sm:$0xff]   ;;  %v2406_v21 = vld [vmem:[%s3275_s3 + $0x1a4] ss:$8 sps:$4 sm:$0xff]  }
  0x20   : > { %472 = vmatprep.subr.bf16.mxu0 %v2322_v23  ;;  %v2408_v22 = vld [vmem:[%s3275_s3 + $0x1a0] ss:$8 sps:$4 sm:$0xff]   ;;  %v2409_v23 = vld [vmem:[%s3275_s3 + $0x1b4] ss:$8 sps:$4 sm:$0xff]   ;;  %v2412_v25 = vld [vmem:[%s3275_s3 + $0x1c4] ss:$8 sps:$4 sm:$0xff]  }
  0x21   : > { %v2414_v26 = vld [vmem:[%s3275_s3 + $0x1c0] ss:$8 sps:$4 sm:$0xff]   ;;  %v2423_v32 = vld [vmem:[%s3275_s3 + $0x1f0] ss:$8 sps:$4 sm:$0xff]   ;;  %v2426_v33 = vld [vmem:[%s3275_s3 + $0x4] ss:$8 sps:$4 sm:$0xff]  }
  0x22   : > { %1099 = vmatpush1.bf16.msra.mxu1 %v2393_v57  ;;  %v781_v35 = vshrl.u32 %v780_v34, 7  ;;  %vm831_vm3 = vsmask.f32 256 }
  0x23   : > { %473 = vmatpush1.bf16.msra.mxu0 %v2324_v24  ;;  %1100 = vmatprep.subr.bf16.mxu1 %v2394_v59  ;;  %v2411_v24 = vld [vmem:[%s3275_s3 + $0x1b0] ss:$8 sps:$4 sm:$0xff]   ;;  %vm832_vm4 = vmand %vm830_vm2, %vm831_vm3 }
  0x24   : > { %582 = vmatprep.subr.bf16.mxu0 %v2327_v27  ;;  %v2415_v27 = vld [vmem:[%s3275_s3 + $0x1d4] ss:$8 sps:$4 sm:$0xff]   ;;  %v2915_v36 = vsub.s32 0, %v781_v35  ;;  %v2920_v38 = vsub.s32 1, %v781_v35 }
  0x25   : > { %v2531_v35 = vld [vmem:[%s3277_s5 + $0x34] ss:$8 sps:$4 sm:$0xff]  }
  0x26   : > { %491 = vmatmul.mubr.bf16.vlgmr.msra.gmra.mrb[0].mxu0 %v376_v29  ;;  %1101 = vmatpush1.bf16.msra.mxu1 %v2396_v61  ;;  %v2418_v29 = vld [vmem:[%s3275_s3 + $0x1e4] ss:$8 sps:$4 sm:$0xff]  }
  0x27   : > { %583 = vmatpush1.bf16.msra.mxu0 %v2325_v28  ;;  %614 = vmatprep.mubr.bf16.mxu0 %v2592_v2  ;;  %v2417_v28 = vld [vmem:[%s3275_s3 + $0x1d0] ss:$8 sps:$4 sm:$0xff]  }
  0x28   : > { %584 = vmatprep.subr.bf16.mxu0 %v2332_v30  ;;  %1102 = vmatprep.subr.bf16.mxu1 %v2397_v63  ;;  %v2420_v30 = vld [vmem:[%s3275_s3 + $0x1e0] ss:$8 sps:$4 sm:$0xff]  }
  0x2a   : > { %1103 = vmatpush1.bf16.msra.mxu1 %v2399_v1 }
  0x2b   : > { %585 = vmatpush1.bf16.msra.mxu0 %v2330_v31  ;;  %1104 = vmatprep.subr.bf16.mxu1 %v2400_v5  ;;  %v2421_v31 = vld [vmem:[%s3275_s3 + $0x1f4] ss:$8 sps:$4 sm:$0xff]  }
  0x2c   : > { %586 = vmatprep.subr.bf16.mxu0 %v2335_v37  ;;  %v778_v37 = vld [vmem:[%s3274_s2] sm:$0x3] }
  0x2d   : > { %v783_v39 = vrot.slane %v778_v37, %v2915_v36  ;;  %v787_v40 = vrot.slane %v778_v37, %v2920_v38  ;;  %v2433_v37 = vld [vmem:[%s3275_s3 + $0x30] ss:$8 sps:$4 sm:$0xff]  }
  0x2e   : > { %1105 = vmatpush1.bf16.msra.mxu1 %v2402_v6 }
  0x2f   : > { %587 = vmatpush1.bf16.msra.mxu0 %v2333_v41  ;;  %1106 = vmatprep.subr.bf16.mxu1 %v2403_v8 }
  0x30   : > { %588 = vmatprep.subr.bf16.mxu0 %v2338_v44 }
  0x32   : > { %1107 = vmatpush1.bf16.msra.mxu1 %v2405_v10 }
  0x33   : > { %589 = vmatpush1.bf16.msra.mxu0 %v2336_v46  ;;  %1108 = vmatprep.subr.bf16.mxu1 %v2406_v21 }
  0x34   : > { %590 = vmatprep.subr.bf16.mxu0 %v2341_v48 }
  0x36   : > { %1109 = vmatpush1.bf16.msra.mxu1 %v2408_v22  ;;  %v2429_v22 = vld [vmem:[%s3275_s3 + $0x14] ss:$8 sps:$4 sm:$0xff]  }
  0x37   : > { %591 = vmatpush1.bf16.msra.mxu0 %v2339_v49  ;;  %1110 = vmatprep.subr.bf16.mxu1 %v2409_v23 }
  0x38   : > { %592 = vmatprep.subr.bf16.mxu0 %v2344_v51 }
  0x3a   : > { %1111 = vmatpush1.bf16.msra.mxu1 %v2411_v24  ;;  %v2520_v24 = vld [vmem:[%s3277_s5] ss:$8 sps:$4 sm:$0xff]  }
  0x3b   : > { %593 = vmatpush1.bf16.msra.mxu0 %v2342_v54  ;;  %1112 = vmatprep.subr.bf16.mxu1 %v2412_v25  ;;  %v2522_v25 = vld [vmem:[%s3277_s5 + $0x4] ss:$8 sps:$4 sm:$0xff]  }
  0x3c   : > { %594 = vmatprep.subr.bf16.mxu0 %v2347_v56 }
  0x3e   : > { %1113 = vmatpush1.bf16.msra.mxu1 %v2414_v26  ;;  %v2427_v26 = vld [vmem:[%s3275_s3 + $0x10] ss:$8 sps:$4 sm:$0xff]  }
  0x3f   : > { %595 = vmatpush1.bf16.msra.mxu0 %v2345_v58  ;;  %1114 = vmatprep.subr.bf16.mxu1 %v2415_v27  ;;  %v2525_v27 = vld [vmem:[%s3277_s5 + $0x14] ss:$8 sps:$4 sm:$0xff]  }
  0x40   : > { %596 = vmatprep.subr.bf16.mxu0 %v2350_v60 }
  0x42   : > { %1115 = vmatpush1.bf16.msra.mxu1 %v2417_v28  ;;  %v2432_v28 = vld [vmem:[%s3275_s3 + $0x24] ss:$8 sps:$4 sm:$0xff]  }
  0x43   : > { %597 = vmatpush1.bf16.msra.mxu0 %v2348_v62  ;;  %1116 = vmatprep.subr.bf16.mxu1 %v2418_v29  ;;  %v2523_v29 = vld [vmem:[%s3277_s5 + $0x10] ss:$8 sps:$4 sm:$0xff]  }
  0x44   : > { %731 = vmatprep.subr.bf16.mxu0 %v2353_v0 }
  0x46   : > { %615 = vmatmul.mubr.bf16.vlgmr.msra.gmra.mrb[0].mxu0 %v2687_v13  ;;  %v2365_v13 = vld [vmem:[%s3273_s1 + $0x144] ss:$8 sps:$4 sm:$0xff]   ;;  %1117 = vmatpush1.bf16.msra.mxu1 %v2420_v30 }
  0x47   : > { %732 = vmatpush1.bf16.msra.mxu0 %v2351_v3  ;;  %763 = vmatprep.mubr.bf16.mxu0 %v2592_v2  ;;  %v2360_v2 = vld [vmem:[%s3273_s1 + $0x130] ss:$8 sps:$4 sm:$0xff]   ;;  %v2528_v30 = vld [vmem:[%s3277_s5 + $0x24] ss:$8 sps:$4 sm:$0xff]  }
  0x48   : > { %733 = vmatprep.subr.bf16.mxu0 %v2356_v4  ;;  %1118 = vmatprep.subr.bf16.mxu1 %v2421_v31  ;;  %v2430_v31 = vld [vmem:[%s3275_s3 + $0x20] ss:$8 sps:$4 sm:$0xff]  }
  0x4a   : > { %1119 = vmatpush1.bf16.msra.mxu1 %v2423_v32  ;;  %v2435_v32 = vld [vmem:[%s3275_s3 + $0x34] ss:$8 sps:$4 sm:$0xff]  }
  0x4b   : > { %734 = vmatpush1.bf16.msra.mxu0 %v2354_v7  ;;  %1291 = vmatprep.subr.bf16.mxu1 %v2426_v33  ;;  %v2526_v33 = vld [vmem:[%s3277_s5 + $0x20] ss:$8 sps:$4 sm:$0xff]  }
  0x4c   : > { %735 = vmatprep.subr.bf16.mxu0 %v2359_v9 }
  0x4f   : > { %736 = vmatpush1.bf16.msra.mxu0 %v2357_v11 }
  0x50   : > { %737 = vmatprep.subr.bf16.mxu0 %v2362_v12 }
  0x53   : > { %738 = vmatpush1.bf16.msra.mxu0 %v2360_v2 }
  0x54   : > { %739 = vmatprep.subr.bf16.mxu0 %v2365_v13 }
  0x57   : > { %740 = vmatpush1.bf16.msra.mxu0 %v2363_v14 }
  0x58   : > { %741 = vmatprep.subr.bf16.mxu0 %v2368_v15 }
  0x5b   : > { %742 = vmatpush1.bf16.msra.mxu0 %v2366_v16 }
  0x5c   : > { %743 = vmatprep.subr.bf16.mxu0 %v2371_v17 }
  0x5f   : > { %744 = vmatpush1.bf16.msra.mxu0 %v2369_v18 }
  0x60   : > { %745 = vmatprep.subr.bf16.mxu0 %v2374_v19  ;;  %v2424_v19 = vld [vmem:[%s3275_s3] ss:$8 sps:$4 sm:$0xff]  }
  0x63   : > { %746 = vmatpush1.bf16.msra.mxu0 %v2372_v20 }
  0x64   : > { %1812 = vmatprep.subr.bf16.mxu0 %v2522_v25  ;;  %v2477_v25 = vld [vmem:[%s3275_s3 + $0x214] ss:$8 sps:$4 sm:$0xff]  }
  0x66   : > { %764 = vmatmul.mubr.bf16.vlgmr.msra.gmra.mrb[0].mxu0 %v2744_v42 }
  0x67   : > { %1813 = vmatpush1.bf16.msra.mxu0 %v2520_v24  ;;  %v2472_v24 = vld [vmem:[%s3275_s3 + $0x200] ss:$8 sps:$4 sm:$0xff]  }
  0x68   : > { %1814 = vmatprep.subr.bf16.mxu0 %v2525_v27  ;;  %v2480_v27 = vld [vmem:[%s3275_s3 + $0x224] ss:$8 sps:$4 sm:$0xff]  }
  0x6b   : > { %1815 = vmatpush1.bf16.msra.mxu0 %v2523_v29  ;;  %v2483_v29 = vld [vmem:[%s3275_s3 + $0x234] ss:$8 sps:$4 sm:$0xff]  }
  0x6c   : > { %1816 = vmatprep.subr.bf16.mxu0 %v2528_v30  ;;  %v2486_v30 = vld [vmem:[%s3275_s3 + $0x244] ss:$8 sps:$4 sm:$0xff]  }
  0x6f   : > { %1817 = vmatpush1.bf16.msra.mxu0 %v2526_v33  ;;  %v2487_v33 = vld [vmem:[%s3275_s3 + $0x250] ss:$8 sps:$4 sm:$0xff]  }
  0x70   : > { %1818 = vmatprep.subr.bf16.mxu0 %v2531_v35  ;;  %v2492_v35 = vld [vmem:[%s3275_s3 + $0x264] ss:$8 sps:$4 sm:$0xff]  }
 0x139   : > { %v765_v41 = vpop.f32.mrb[0].mxu0 }
 0x13a   : > { %v790_v42 = vadd.f32 %v783_v39, %v765_v41  ;;  %v767_v43 = vpop.f32.mrb[1].mxu0  ;;  %v2534_v41 = vld [vmem:[%s3277_s5 + $0x44] ss:$8 sps:$4 sm:$0xff]  }
 0x13b   : > { %v791_v44 = vadd.f32 %v787_v40, %v767_v43  ;;  %v769_v45 = vpop.f32.mrb[2].mxu0  ;;  %v2441_v43 = vld [vmem:[%s3275_s3 + $0x54] ss:$8 sps:$4 sm:$0xff]  }
 0x13c   : > { %v794_v46 = vmax.f32 %v790_v42, 0.0  ;;  %v792_v47 = vadd.f32 %v783_v39, %v769_v45  ;;  %v771_v48 = vpop.f32.mrb[3].mxu0  ;;  %v2438_v39 = vld [vmem:[%s3275_s3 + $0x44] ss:$8 sps:$4 sm:$0xff]   ;;  %v2436_v42 = vld [vmem:[%s3275_s3 + $0x40] ss:$8 sps:$4 sm:$0xff]  }
 0x13d   : > { %v795_v49 = vmax.f32 %v791_v44, 0.0  ;;  %v793_v50 = vadd.f32 %v787_v40, %v771_v48  ;;  %v2529_v40 = vld [vmem:[%s3277_s5 + $0x30] ss:$8 sps:$4 sm:$0xff]   ;;  %v2532_v44 = vld [vmem:[%s3277_s5 + $0x40] ss:$8 sps:$4 sm:$0xff]  }
 0x13e   : > { %v796_v51 = vmax.f32 %v792_v47, 0.0  ;;  %1819 = vmatpush1.bf16.msra.mxu0 %v2529_v40  ;;  %v2537_v45 = vld [vmem:[%s3277_s5 + $0x54] ss:$8 sps:$4 sm:$0xff]   ;;  %v2444_v47 = vld [vmem:[%s3275_s3 + $0x64] ss:$8 sps:$4 sm:$0xff]  }
 0x13f   : > { %v2273_v52 = vpack.c.bf16 %v795_v49, %v794_v46  ;;  %v797_v53 = vmax.f32 %v793_v50, 0.0  ;;  %1820 = vmatprep.subr.bf16.mxu0 %v2534_v41  ;;  %v2535_v48 = vld [vmem:[%s3277_s5 + $0x50] ss:$8 sps:$4 sm:$0xff]   ;;  %v2442_v50 = vld [vmem:[%s3275_s3 + $0x60] ss:$8 sps:$4 sm:$0xff]  }
 0x140   : > { %v798_v54 = vpack.c.bf16 %v796_v51, %v794_v46  ;;  %v2439_v46 = vld [vmem:[%s3275_s3 + $0x50] ss:$8 sps:$4 sm:$0xff]   ;;  %v2498_v41 = vld [vmem:[%s3275_s3 + $0x284] ss:$8 sps:$4 sm:$0xff]  }
 0x141   : > { %810 = vst [vmem:[%s313_s18] sm:$0xff] %v2273_v52  ;;  %v799_v55 = vpack.c.bf16 %v797_v53, %v795_v49  ;;  %v2274_v56 = vpack.c.bf16 %v797_v53, %v796_v51  ;;  %v2540_v49 = vld [vmem:[%s3277_s5 + $0x64] ss:$8 sps:$4 sm:$0xff]   ;;  %v2447_v51 = vld [vmem:[%s3275_s3 + $0x74] ss:$8 sps:$4 sm:$0xff]   ;;  %v2538_v52 = vld [vmem:[%s3277_s5 + $0x60] ss:$8 sps:$4 sm:$0xff]  }
 0x142   : > { %v813_v57 = vshrl.u32 %v798_v54, 16  ;;  %v816_v60 = vshll.u32 %v798_v54, 16  ;;  %1821 = vmatpush1.bf16.msra.mxu0 %v2532_v44  ;;  %v2543_v53 = vld [vmem:[%s3277_s5 + $0x74] ss:$8 sps:$4 sm:$0xff]   ;;  %v2445_v54 = vld [vmem:[%s3275_s3 + $0x70] ss:$8 sps:$4 sm:$0xff]  }
 0x143   : > { %811 = vst [vmem:[%s313_s18 + $0x8] sm:$0xff] %v2274_v56  ;;  %v820_v58 = vshrl.u32 %v799_v55, 16  ;;  %v823_v62 = vshll.u32 %v799_v55, 16  ;;  %1822 = vmatprep.subr.bf16.mxu0 %v2537_v45  ;;  %v2450_v55 = vld [vmem:[%s3275_s3 + $0x84] ss:$8 sps:$4 sm:$0xff]  }
 0x144   : > { %v815_v59 = vrot.slane %v813_v57, 7  ;;  %v2541_v56 = vld [vmem:[%s3277_s5 + $0x70] ss:$8 sps:$4 sm:$0xff]   ;;  %v2546_v57 = vld [vmem:[%s3277_s5 + $0x84] ss:$8 sps:$4 sm:$0xff]  }
 0x145   : > { %v822_v61 = vrot.slane %v820_v58, 7  ;;  %v2448_v58 = vld [vmem:[%s3275_s3 + $0x80] ss:$8 sps:$4 sm:$0xff]   ;;  %v2493_v40 = vld [vmem:[%s3275_s3 + $0x270] ss:$8 sps:$4 sm:$0xff]  }
 0x146   : > { %v818_v63 = vor.u32 %v816_v60, %v815_v59  ;;  %v2930_v4 = vsel %vm832_vm4, %v815_v59, 0  ;;  %1823 = vmatpush1.bf16.msra.mxu0 %v2535_v48  ;;  %v2453_v59 = vld [vmem:[%s3275_s3 + $0x94] ss:$8 sps:$4 sm:$0xff]   ;;  %v2544_v60 = vld [vmem:[%s3277_s5 + $0x80] ss:$8 sps:$4 sm:$0xff]  }
 0x147   : > { %v825_v0 = vor.u32 %v823_v62, %v822_v61  ;;  %v836_v1 = vsel %vm832_vm4, %v822_v61, 0  ;;  %v910_v2 = vshll.u32 %v2930_v4, 16  ;;  %1824 = vmatprep.subr.bf16.mxu0 %v2540_v49  ;;  %v2549_v61 = vld [vmem:[%s3277_s5 + $0x94] ss:$8 sps:$4 sm:$0xff]   ;;  %v2451_v62 = vld [vmem:[%s3275_s3 + $0x90] ss:$8 sps:$4 sm:$0xff]  }
 0x148   : > { %v2928_v3 = vsel %vm832_vm4, 0, %v818_v63  ;;  %v922_v8 = vshll.u32 %v836_v1, 16  ;;  %v1375_v10 = vrot.slane %v836_v1, 1  ;;  %v2456_v63 = vld [vmem:[%s3275_s3 + $0xa4] ss:$8 sps:$4 sm:$0xff]  }
 0x149   : > { %v834_v5 = vsel %vm832_vm4, 0, %v825_v0  ;;  %v905_v6 = vshll.u32 %v2928_v3, 16  ;;  %v903_v11 = vshrl.u32 %v2928_v3, 16  ;;  %v912_v20 = vrot.slane %v910_v2, 1  ;;  %v2547_v0 = vld [vmem:[%s3277_s5 + $0x90] ss:$8 sps:$4 sm:$0xff]  }
 0x14a   : > { %v917_v7 = vshll.u32 %v834_v5, 16  ;;  %v1374_v9 = vrot.slane %v834_v5, 1  ;;  %v915_v13 = vshrl.u32 %v834_v5, 16  ;;  %v924_v18 = vrot.slane %v922_v8, 1  ;;  %1825 = vmatpush1.bf16.msra.mxu0 %v2538_v52  ;;  %v2552_v1 = vld [vmem:[%s3277_s5 + $0xa4] ss:$8 sps:$4 sm:$0xff]  }
 0x14b   : > { %v907_v12 = vrot.slane %v905_v6, 1  ;;  %1826 = vmatprep.subr.bf16.mxu0 %v2543_v53  ;;  %v2459_v6 = vld [vmem:[%s3275_s3 + $0xb4] ss:$8 sps:$4 sm:$0xff]   ;;  %v2460_v2 = vld [vmem:[%s3275_s3 + $0xc0] ss:$8 sps:$4 sm:$0xff]  }
 0x14c   : > { %v919_v14 = vrot.slane %v917_v7, 1  ;;  %v2936_v15 = vsel %vm646_vm1, %v1374_v9, %v1375_v10  ;;  %v2550_v7 = vld [vmem:[%s3277_s5 + $0xa0] ss:$8 sps:$4 sm:$0xff]   ;;  %v2555_v8 = vld [vmem:[%s3277_s5 + $0xb4] ss:$8 sps:$4 sm:$0xff]  }
 0x14d   : > { %v908_v16 = vor.u32 %v907_v12, %v903_v11  ;;  %v2457_v9 = vld [vmem:[%s3275_s3 + $0xb0] ss:$8 sps:$4 sm:$0xff]   ;;  %v2462_v10 = vld [vmem:[%s3275_s3 + $0xc4] ss:$8 sps:$4 sm:$0xff]  }
 0x14e   : > { %v920_v17 = vor.u32 %v919_v14, %v915_v13  ;;  %1827 = vmatpush1.bf16.msra.mxu0 %v2541_v56  ;;  %v2553_v11 = vld [vmem:[%s3277_s5 + $0xb0] ss:$8 sps:$4 sm:$0xff]   ;;  %v2558_v12 = vld [vmem:[%s3277_s5 + $0xc4] ss:$8 sps:$4 sm:$0xff]   ;;  %v2465_v13 = vld [vmem:[%s3275_s3 + $0xd4] ss:$8 sps:$4 sm:$0xff]  }
 0x14f   : > { %v913_v23 = vsel %vm364_vm0, %v908_v16, %v912_v20  ;;  %1828 = vmatprep.subr.bf16.mxu0 %v2546_v57  ;;  %v2556_v14 = vld [vmem:[%s3277_s5 + $0xc0] ss:$8 sps:$4 sm:$0xff]   ;;  %v2561_v16 = vld [vmem:[%s3277_s5 + $0xd4] ss:$8 sps:$4 sm:$0xff]   ;;  %v2499_v44 = vld [vmem:[%s3275_s3 + $0x290] ss:$8 sps:$4 sm:$0xff]  }
 0x150   : > { %v925_v21 = vsel %vm364_vm0, %v920_v17, %v924_v18  ;;  %v2463_v17 = vld [vmem:[%s3275_s3 + $0xd0] ss:$8 sps:$4 sm:$0xff]   ;;  %v2468_v18 = vld [vmem:[%s3275_s3 + $0xe4] ss:$8 sps:$4 sm:$0xff]   ;;  %v2466_v20 = vld [vmem:[%s3275_s3 + $0xe0] ss:$8 sps:$4 sm:$0xff]  }
 0x151   : > { %1120 = vmatprep.mubr.bf16.mxu1 %v925_v21  ;;  %v2471_v21 = vld [vmem:[%s3275_s3 + $0xf4] ss:$8 sps:$4 sm:$0xff]   ;;  %v2504_v45 = vld [vmem:[%s3275_s3 + $0x2a4] ss:$8 sps:$4 sm:$0xff]   ;;  %v2505_v48 = vld [vmem:[%s3275_s3 + $0x2b0] ss:$8 sps:$4 sm:$0xff]  }
 0x152   : > { %1121 = vmatmul.mubr.bf16.vlgmr.msra.gmra.mrb[0].mxu1 %v913_v23  ;;  %1829 = vmatpush1.bf16.msra.mxu0 %v2544_v60  ;;  %v2474_v23 = vld [vmem:[%s3275_s3 + $0x204] ss:$8 sps:$4 sm:$0xff]   ;;  %v2511_v52 = vld [vmem:[%s3275_s3 + $0x2d0] ss:$8 sps:$4 sm:$0xff]   ;;  %v1371_v57 = vrot.slane %v2928_v3, 1 }
 0x153   : > { %1292 = vmatpush1.bf16.msra.mxu1 %v2424_v19  ;;  %1323 = vmatprep.mubr.bf16.mxu1 %v834_v5  ;;  %v2454_v5 = vld [vmem:[%s3275_s3 + $0xa0] ss:$8 sps:$4 sm:$0xff]   ;;  %v2559_v19 = vld [vmem:[%s3277_s5 + $0xd0] ss:$8 sps:$4 sm:$0xff]   ;;  %v2510_v49 = vld [vmem:[%s3275_s3 + $0x2c4] ss:$8 sps:$4 sm:$0xff]  }
 0x154   : > { %1293 = vmatprep.subr.bf16.mxu1 %v2429_v22  ;;  %1830 = vmatprep.subr.bf16.mxu0 %v2549_v61  ;;  %v2469_v22 = vld [vmem:[%s3275_s3 + $0xf0] ss:$8 sps:$4 sm:$0xff]   ;;  %v2516_v53 = vld [vmem:[%s3275_s3 + $0x2e4] ss:$8 sps:$4 sm:$0xff]   ;;  %v2562_v61 = vld [vmem:[%s3277_s5 + $0xe0] ss:$8 sps:$4 sm:$0xff]  }
 0x155   : > { %v2517_v56 = vld [vmem:[%s3275_s3 + $0x2f0] ss:$8 sps:$4 sm:$0xff]   ;;  %v2564_v60 = vld [vmem:[%s3277_s5 + $0xe4] ss:$8 sps:$4 sm:$0xff]  }
 0x156   : > { %1831 = vmatpush1.bf16.msra.mxu0 %v2547_v0 }
 0x157   : > { %1294 = vmatpush1.bf16.msra.mxu1 %v2427_v26  ;;  %1832 = vmatprep.subr.bf16.mxu0 %v2552_v1  ;;  %v2475_v26 = vld [vmem:[%s3275_s3 + $0x210] ss:$8 sps:$4 sm:$0xff]  }
 0x158   : > { %1295 = vmatprep.subr.bf16.mxu1 %v2432_v28  ;;  %v2478_v28 = vld [vmem:[%s3275_s3 + $0x220] ss:$8 sps:$4 sm:$0xff]  }
 0x15a   : > { %1833 = vmatpush1.bf16.msra.mxu0 %v2550_v7 }
 0x15b   : > { %1296 = vmatpush1.bf16.msra.mxu1 %v2430_v31  ;;  %1834 = vmatprep.subr.bf16.mxu0 %v2555_v8  ;;  %v2484_v31 = vld [vmem:[%s3275_s3 + $0x240] ss:$8 sps:$4 sm:$0xff]  }
 0x15c   : > { %1297 = vmatprep.subr.bf16.mxu1 %v2435_v32  ;;  %v2489_v32 = vld [vmem:[%s3275_s3 + $0x254] ss:$8 sps:$4 sm:$0xff]  }
 0x15e   : > { %1835 = vmatpush1.bf16.msra.mxu0 %v2553_v11 }
 0x15f   : > { %1298 = vmatpush1.bf16.msra.mxu1 %v2433_v37  ;;  %1836 = vmatprep.subr.bf16.mxu0 %v2558_v12  ;;  %v2490_v37 = vld [vmem:[%s3275_s3 + $0x260] ss:$8 sps:$4 sm:$0xff]  }
 0x160   : > { %1299 = vmatprep.subr.bf16.mxu1 %v2438_v39  ;;  %v2495_v39 = vld [vmem:[%s3275_s3 + $0x274] ss:$8 sps:$4 sm:$0xff]  }
 0x162   : > { %1837 = vmatpush1.bf16.msra.mxu0 %v2556_v14 }
 0x163   : > { %1300 = vmatpush1.bf16.msra.mxu1 %v2436_v42  ;;  %1838 = vmatprep.subr.bf16.mxu0 %v2561_v16  ;;  %v2496_v42 = vld [vmem:[%s3275_s3 + $0x280] ss:$8 sps:$4 sm:$0xff]  }
 0x164   : > { %1301 = vmatprep.subr.bf16.mxu1 %v2441_v43  ;;  %v2501_v43 = vld [vmem:[%s3275_s3 + $0x294] ss:$8 sps:$4 sm:$0xff]  }
 0x166   : > { %1839 = vmatpush1.bf16.msra.mxu0 %v2559_v19 }
 0x167   : > { %1302 = vmatpush1.bf16.msra.mxu1 %v2439_v46  ;;  %v2502_v46 = vld [vmem:[%s3275_s3 + $0x2a0] ss:$8 sps:$4 sm:$0xff]   ;;  %1840 = vmatprep.subr.bf16.mxu0 %v2564_v60 }
 0x168   : > { %1303 = vmatprep.subr.bf16.mxu1 %v2444_v47  ;;  %v2507_v47 = vld [vmem:[%s3275_s3 + $0x2b4] ss:$8 sps:$4 sm:$0xff]  }
 0x16a   : > { %1841 = vmatpush1.bf16.msra.mxu0 %v2562_v61 }
 0x16b   : > { %1304 = vmatpush1.bf16.msra.mxu1 %v2442_v50  ;;  %v2508_v50 = vld [vmem:[%s3275_s3 + $0x2c0] ss:$8 sps:$4 sm:$0xff]  }
 0x16c   : > { %1305 = vmatprep.subr.bf16.mxu1 %v2447_v51  ;;  %v2513_v51 = vld [vmem:[%s3275_s3 + $0x2d4] ss:$8 sps:$4 sm:$0xff]  }
 0x16f   : > { %1306 = vmatpush1.bf16.msra.mxu1 %v2445_v54  ;;  %v2514_v54 = vld [vmem:[%s3275_s3 + $0x2e0] ss:$8 sps:$4 sm:$0xff]  }
 0x170   : > { %1307 = vmatprep.subr.bf16.mxu1 %v2450_v55  ;;  %v2519_v55 = vld [vmem:[%s3275_s3 + $0x2f4] ss:$8 sps:$4 sm:$0xff]  }
 0x173   : > { %1308 = vmatpush1.bf16.msra.mxu1 %v2448_v58  ;;  %v1372_v58 = vrot.slane %v2930_v4, 1  ;;  %v2565_v4 = vld [vmem:[%s3277_s5 + $0xf0] ss:$8 sps:$4 sm:$0xff]  }
 0x174   : > { %1309 = vmatprep.subr.bf16.mxu1 %v2453_v59 }
 0x175   : > { %v1373_v59 = vsel %vm646_vm1, %v1371_v57, %v1372_v58 }
 0x177   : > { %1310 = vmatpush1.bf16.msra.mxu1 %v2451_v62  ;;  %v1586_v62 = vld [vmem:[%s3276_s4] sm:$0x3] }
 0x178   : > { %1311 = vmatprep.subr.bf16.mxu1 %v2456_v63  ;;  %v1591_v63 = vrot.slane %v1586_v62, %v2915_v36  ;;  %v1595_v0 = vrot.slane %v1586_v62, %v2920_v38 }
 0x17b   : > { %1312 = vmatpush1.bf16.msra.mxu1 %v2454_v5 }
 0x17c   : > { %1313 = vmatprep.subr.bf16.mxu1 %v2459_v6 }
 0x17f   : > { %1314 = vmatpush1.bf16.msra.mxu1 %v2457_v9 }
 0x180   : > { %1315 = vmatprep.subr.bf16.mxu1 %v2462_v10 }
 0x183   : > { %1316 = vmatpush1.bf16.msra.mxu1 %v2460_v2 }
 0x184   : > { %1317 = vmatprep.subr.bf16.mxu1 %v2465_v13 }
 0x187   : > { %1318 = vmatpush1.bf16.msra.mxu1 %v2463_v17 }
 0x188   : > { %1319 = vmatprep.subr.bf16.mxu1 %v2468_v18  ;;  %v1856_v18 = vand.u32 127, %v780_v34 }
 0x18a   : > { %v1857_v19 = vadd.s32 128, %v1856_v18 }
 0x18b   : > { %1320 = vmatpush1.bf16.msra.mxu1 %v2466_v20  ;;  %v1640_v20 = vld [vmem:[%s3278_s6] sm:$0x3] }
 0x18c   : > { %1321 = vmatprep.subr.bf16.mxu1 %v2471_v21  ;;  %v1858_v21 = vand.u32 15, %v1856_v18 }
 0x18e   : > { %vm3241_vm5 = vcmp.lt.s32.totalorder %v1858_v21, 3 }
 0x18f   : > { %1322 = vmatpush1.bf16.msra.mxu1 %v2469_v22  ;;  %v1645_v22 = vrot.slane %v1640_v20, %v2915_v36 }
 0x190   : > { %1539 = vmatprep.subr.bf16.mxu1 %v2474_v23  ;;  %v1859_v23 = vand.u32 15, %v1857_v19 }
 0x192   : > { %1324 = vmatmul.mubr.bf16.vlgmr.msra.gmra.mrb[0].mxu1 %v2928_v3  ;;  %v2567_v3 = vld [vmem:[%s3277_s5 + $0xf4] ss:$8 sps:$4 sm:$0xff]   ;;  %vm3245_vm6 = vcmp.lt.s32.totalorder %v1859_v23, 3 }
 0x193   : > { %1540 = vmatpush1.bf16.msra.mxu1 %v2472_v24  ;;  %1571 = vmatprep.mubr.bf16.mxu1 %v2936_v15  ;;  %v2481_v15 = vld [vmem:[%s3275_s3 + $0x230] ss:$8 sps:$4 sm:$0xff]   ;;  %v1649_v24 = vrot.slane %v1640_v20, %v2920_v38 }
 0x194   : > { %1541 = vmatprep.subr.bf16.mxu1 %v2477_v25  ;;  %1842 = vmatprep.subr.bf16.mxu0 %v2567_v3 }
 0x195   : > { %1843 = vmatpush1.bf16.msra.mxu0 %v2565_v4 }
 0x197   : > { %1542 = vmatpush1.bf16.msra.mxu1 %v2475_v26 }
 0x198   : > { %1543 = vmatprep.subr.bf16.mxu1 %v2480_v27 }
 0x19b   : > { %1544 = vmatpush1.bf16.msra.mxu1 %v2478_v28 }
 0x19c   : > { %1545 = vmatprep.subr.bf16.mxu1 %v2483_v29 }
 0x19f   : > { %1546 = vmatpush1.bf16.msra.mxu1 %v2481_v15 }
 0x1a0   : > { %1547 = vmatprep.subr.bf16.mxu1 %v2486_v30 }
 0x1a3   : > { %1548 = vmatpush1.bf16.msra.mxu1 %v2484_v31 }
 0x1a4   : > { %1549 = vmatprep.subr.bf16.mxu1 %v2489_v32 }
 0x1a7   : > { %1550 = vmatpush1.bf16.msra.mxu1 %v2487_v33 }
 0x1a8   : > { %1551 = vmatprep.subr.bf16.mxu1 %v2492_v35 }
 0x1ab   : > { %1552 = vmatpush1.bf16.msra.mxu1 %v2490_v37 }
 0x1ac   : > { %1553 = vmatprep.subr.bf16.mxu1 %v2495_v39 }
 0x1af   : > { %1554 = vmatpush1.bf16.msra.mxu1 %v2493_v40 }
 0x1b0   : > { %1555 = vmatprep.subr.bf16.mxu1 %v2498_v41 }
 0x1b3   : > { %1556 = vmatpush1.bf16.msra.mxu1 %v2496_v42 }
 0x1b4   : > { %1557 = vmatprep.subr.bf16.mxu1 %v2501_v43 }
 0x1b7   : > { %1558 = vmatpush1.bf16.msra.mxu1 %v2499_v44 }
 0x1b8   : > { %1559 = vmatprep.subr.bf16.mxu1 %v2504_v45 }
 0x1bb   : > { %1560 = vmatpush1.bf16.msra.mxu1 %v2502_v46 }
 0x1bc   : > { %1561 = vmatprep.subr.bf16.mxu1 %v2507_v47 }
 0x1bf   : > { %1562 = vmatpush1.bf16.msra.mxu1 %v2505_v48 }
 0x1c0   : > { %1563 = vmatprep.subr.bf16.mxu1 %v2510_v49 }
 0x1c3   : > { %1564 = vmatpush1.bf16.msra.mxu1 %v2508_v50 }
 0x1c4   : > { %1565 = vmatprep.subr.bf16.mxu1 %v2513_v51 }
 0x1c7   : > { %1566 = vmatpush1.bf16.msra.mxu1 %v2511_v52 }
 0x1c8   : > { %1567 = vmatprep.subr.bf16.mxu1 %v2516_v53 }
 0x1cb   : > { %1568 = vmatpush1.bf16.msra.mxu1 %v2514_v54 }
 0x1cc   : > { %1569 = vmatprep.subr.bf16.mxu1 %v2519_v55 }
 0x1cf   : > { %1570 = vmatpush1.bf16.msra.mxu1 %v2517_v56 }
 0x1d2   : > { %1572 = vmatmul.mubr.bf16.vlgmr.msra.gmra.mrb[0].mxu1 %v1373_v59 }
 0x2a5   : > { %v1573_v1 = vpop.f32.mrb[0].mxu1 }
 0x2a6   : > { %v1598_v5 = vadd.f32 %v1591_v63, %v1573_v1  ;;  %v1575_v6 = vpop.f32.mrb[1].mxu1 }
 0x2a7   : > { %v1599_v7 = vadd.f32 %v1595_v0, %v1575_v6  ;;  %v1577_v8 = vpop.f32.mrb[2].mxu1 }
 0x2a8   : > { %v1600_v9 = vadd.f32 %v1591_v63, %v1577_v8  ;;  %v1579_v10 = vpop.f32.mrb[3].mxu1  ;;  %v1602_v12 = vmax.f32 %v1598_v5, 0.0 }
 0x2a9   : > { %v1601_v11 = vadd.f32 %v1595_v0, %v1579_v10  ;;  %v1603_v13 = vmax.f32 %v1599_v7, 0.0 }
 0x2aa   : > { %v1604_v2 = vmax.f32 %v1600_v9, 0.0 }
 0x2ab   : > { %v1605_v14 = vmax.f32 %v1601_v11, 0.0 }
 0x2ac   : > { %v1606_v16 = vpack.c.bf16 %v1604_v2, %v1602_v12 }
 0x2ad   : > { %v1607_v17 = vpack.c.bf16 %v1605_v14, %v1603_v13 }
 0x2af   : > { %1844 = vmatprep.mubr.bf16.mxu0 %v1607_v17 }
 0x2b0   : > { %1845 = vmatmul.mubr.bf16.vlgmr.msra.gmra.mrb[4].mxu0 %v1606_v16 }
 0x383   : > { %v1846_v25 = vpop.f32.mrb[4].mxu0 }
 0x384   : > { %v1847_v27 = vadd.f32 %v1846_v25, %v1645_v22  ;;  %v1848_v28 = vpop.f32.mrb[5].mxu0 }
 0x385   : > { %v1849_v29 = vadd.f32 %v1848_v28, %v1649_v24  ;;  %v1850_v15 = vpop.f32.mrb[6].mxu0 }
 0x386   : > { %v1862_v30 = vsel %vm3241_vm5, %v1847_v27, 0.0  ;;  %v1851_v36 = vadd.f32 %v1850_v15, %v1645_v22  ;;  %v1852_v31 = vpop.f32.mrb[7].mxu0 }
 0x387   : > { %v1866_v32 = vsub.f32 0.0, %v1862_v30  ;;  %v1863_v38 = vsel %vm3245_vm6, %v1849_v29, 0.0  ;;  %v1853_v33 = vadd.f32 %v1852_v31, %v1649_v24 }
 0x388   : > { %v1867_v35 = vsub.f32 0.0, %v1863_v38  ;;  %v1864_v37 = vsel %vm3241_vm5, %v1851_v36, 0.0 }
 0x389   : > { %v1870_v39 = vmul.f32 1.442695, %v1866_v32  ;;  %v1868_v40 = vsub.f32 0.0, %v1864_v37  ;;  %v1865_v41 = vsel %vm3245_vm6, %v1853_v33, 0.0 }
 0x38a   : > { %v1872_v42 = vmul.f32 1.442695, %v1867_v35  ;;  %v1869_v43 = vsub.f32 0.0, %v1865_v41 }
 0x38b   : > { %2568 = vpow2.f32 %v1870_v39  ;;  %v1874_v44 = vmul.f32 1.442695, %v1868_v40 }
 0x38c   : > { %2570 = vpow2.f32 %v1872_v42  ;;  %v1876_v45 = vmul.f32 1.442695, %v1869_v43 }
 0x38d   : > { %2572 = vpow2.f32 %v1874_v44 }
 0x38e   : > { %2574 = vpow2.f32 %v1876_v45 }
 0x395   : > { %v2569_v46 = vpop.eup %2568 }
 0x396   : > { %v2571_v47 = vpop.eup %2570  ;;  %v1878_v48 = vadd.f32 1.0, %v2569_v46 }
 0x397   : > { %v2573_v49 = vpop.eup %2572  ;;  %v1879_v50 = vadd.f32 1.0, %v2571_v47 }
 0x398   : > { %v2575_v51 = vpop.eup %2574  ;;  %2576 = vrcp.f32 %v1878_v48  ;;  %v1880_v52 = vadd.f32 1.0, %v2573_v49 }
 0x399   : > { %2578 = vrcp.f32 %v1879_v50  ;;  %v1881_v53 = vadd.f32 1.0, %v2575_v51 }
 0x39a   : > { %2580 = vrcp.f32 %v1880_v52 }
 0x39b   : > { %2582 = vrcp.f32 %v1881_v53 }
 0x3a2   : > { %v2577_v54 = vpop.eup %2576 }
 0x3a3   : > { %v2579_v55 = vpop.eup %2578  ;;  %v1886_v56 = vsel %vm3241_vm5, %v2577_v54, %v1847_v27 }
 0x3a4   : > { %v2581_v57 = vpop.eup %2580  ;;  %1890 = vst [vmem:[%s318_s17] sm:$0xff] %v1886_v56  ;;  %v1887_v58 = vsel %vm3245_vm6, %v2579_v55, %v1849_v29 }
 0x3a5   : > { %v2583_v59 = vpop.eup %2582  ;;  %1891 = vst [vmem:[%s318_s17 + $0x8] sm:$0xff] %v1887_v58  ;;  %v1888_v60 = vsel %vm3241_vm5, %v2581_v57, %v1851_v36 }
 0x3a6   : > { %1892 = vst [vmem:[%s318_s17 + $0x10] sm:$0xff] %v1888_v60  ;;  %v1889_v61 = vsel %vm3245_vm6, %v2583_v59, %v1853_v33 }
 0x3a7   : > { %1893 = vst [vmem:[%s318_s17 + $0x18] sm:$0xff] %v1889_v61 }
 0x3a8 PF: > { %s19_s27 = sadd.s32 1, %s2590_s27  }
 0x3a9   : > { %p16_p4 = scmp.ge.s32.totalorder %s19_s27, 4  }
 0x3ab   :  { %18 = sbr.rel (!%p16_p4) target bundleno = 1 (0x1), region = 94 }

// kernel: custom-call
= control target key start
LH: loop header
LB: loop body
LE: loop exit
PB: predicated region body
PF: predicated region fallthrough
CT: control target
= control target key end

     0   :  { %5 = vsyncpa [#allocation9], 0  ;;  %v1086_v0 = vmov 2147483648   ;;  %v1087_v1 = vmov 2147483647   ;;  %s1221_s0 = inlined_call_operand.vmem [shape: f32[2,768], index: 0, kind: input, shape index: {}]   ;;  %s1222_s1 = inlined_call_operand.hbm [shape: f32[2,8], index: 1, kind: output, shape index: {0}]   ;;  %s1223_s2 = inlined_call_operand.vmem [shape: s32[2,8], index: 2, kind: output, shape index: {1}]  }
   0x1   :  { %7 = vst [vmem:[#allocation12] sm:$0xff] %v1086_v0  ;;  %8 = vst [vmem:[#allocation14] sm:$0xff] %v1087_v1 }
   0x2   :  { %v1022_v2 = vld [vmem:[%s1221_s0 + $0x8] sm:$0xf]  ;;  %v43_v3 = vlaneseq  ;;  %v27_v4 = vld [vmem:[%s1221_s0] sm:$0xff]  ;;  %v1088_v5 = vmov 2147483648   ;;  %v1089_v6 = vmov 2147483647  }
   0x3   :  { %39 = vst [vmem:[#allocation16 + $0x8] sm:$0xf] %v1022_v2  ;;  %84 = vst [vmem:[#allocation13] sm:$0xff] %v1088_v5  ;;  %v54_v10 = vsub.s32 2147483647, %v27_v4  ;;  %vm53_vm0 = vcmp.lt.s32.totalorder %v27_v4, 0 }
   0x4   :  { %85 = vst [vmem:[#allocation15] sm:$0xff] %v1089_v6  ;;  %v1118_v7 = vshrl.u32 %v43_v3, 7  ;;  %v44_v8 = vand.u32 127, %v43_v3  ;;  %s1122_s0 = smov 0  }
   0x5   :  { %v55_v13 = vsel %vm53_vm0, %v54_v10, %v27_v4 }
   0x6   :  { %v47_v9 = vshrl.u32 %v1118_v7, 1 }
   0x8   :  { %v49_v11 = vmul.u32 128, %v47_v9 }
   0xa   :  { %v50_v12 = vadd.s32 %v49_v11, %v44_v8  ;;  %v61_v14 = vld [vmem:[#allocation16 + $0x8] sm:$0xff] }
   0xb   :  { %vm62_vm1 = vcmp.lt.s32.totalorder %v61_v14, 0  ;;  %v63_v15 = vsub.s32 2147483647, %v61_v14 }
   0xc   :  { %vm57_vm2 = vcmp.lt.s32.totalorder %v50_v12, 768  ;;  %v65_v16 = vadd.s32 512, %v50_v12  ;;  %79 = vst [vmem:[#allocation17] sm:$0xff] %v50_v12 }
   0xd   :  { %v58_v17 = vsel %vm57_vm2, %v55_v13, 2147483648  ;;  %v64_v18 = vsel %vm62_vm1, %v63_v15, %v61_v14 }
   0xe   :  { %59 = vst [vmem:[#allocation16] sm:$0xff] %v58_v17  ;;  %vm66_vm3 = vcmp.lt.s32.totalorder %v65_v16, 768  ;;  %82 = vst [vmem:[#allocation17 + $0x8] sm:$0xff] %v65_v16 }
   0xf   :  { %v67_v19 = vsel %vm66_vm3, %v64_v18, 2147483648 }
  0x10   :  { %68 = vst [vmem:[#allocation16 + $0x8] sm:$0xff] %v67_v19 }
  0x11 LB: > { %s419_s13 = scalar_lea.vmem [#allocation13], %s1084_s0  ;;  %s421_s14 = scalar_lea.vmem [#allocation15], %s1084_s0  ;;  %s1084_s0 = sphi %s1122_s0, %s92_s0  }
  0x12   : > { %s92_s0 = sadd.s32 1, %s1084_s0  }
  0x13   : > { %v94_v21 = vld [vmem:[#allocation17] sm:$0xff]  ;;  %p89_p2 = scmp.ge.s32.totalorder %s92_s0, 8  }
  0x14   :  { %s1095_s0 = smov (%p89_p2), [#allocation8]  }
  0x15   : > { %v93_v20 = vld [vmem:[#allocation16] sm:$0xff]  ;;  %v99_v23 = vld [vmem:[#allocation17 + $0x8] sm:$0xff] }
  0x16   : > { %vm103_vm6 = vcmp.lt.s32.totalorder %v99_v23, %v94_v21 }
  0x17   : > { %v97_v22 = vld [vmem:[#allocation16 + $0x8] sm:$0xff] }
  0x18   : > { %vm101_vm4 = vcmp.gt.s32.totalorder %v97_v22, %v93_v20  ;;  %vm102_vm5 = vcmp.eq.s32.totalorder %v97_v22, %v93_v20 }
  0x19   : > { %vm104_vm7 = vmand %vm102_vm5, %vm103_vm6 }
  0x1a   : > { %vm105_vm8 = vmor %vm101_vm4, %vm104_vm7 }
  0x1b   : > { %v106_v24 = vsel %vm105_vm8, %v97_v22, %v93_v20  ;;  %v107_v25 = vsel %vm105_vm8, %v99_v23, %v94_v21 }
  0x1c   : > { %v109_v26 = vrot.slane %v106_v24, 2  ;;  %v110_v27 = vrot.slane %v107_v25, 2 }
  0x1e   : > { %vm112_vm9 = vcmp.gt.s32.totalorder %v109_v26, %v106_v24  ;;  %vm113_vm10 = vcmp.eq.s32.totalorder %v109_v26, %v106_v24  ;;  %vm114_vm11 = vcmp.lt.s32.totalorder %v110_v27, %v107_v25 }
  0x1f   : > { %vm115_vm12 = vmand %vm113_vm10, %vm114_vm11 }
  0x20   : > { %vm116_vm13 = vmor %vm112_vm9, %vm115_vm12 }
  0x21   : > { %v117_v28 = vsel %vm116_vm13, %v109_v26, %v106_v24  ;;  %v118_v29 = vsel %vm116_vm13, %v110_v27, %v107_v25 }
  0x22   : > { %v120_v30 = vrot.slane %v117_v28, 2  ;;  %v121_v31 = vrot.slane %v118_v29, 2 }
  0x24   : > { %vm123_vm14 = vcmp.gt.s32.totalorder %v120_v30, %v117_v28  ;;  %vm124_vm15 = vcmp.eq.s32.totalorder %v120_v30, %v117_v28  ;;  %vm125_vm0 = vcmp.lt.s32.totalorder %v121_v31, %v118_v29 }
  0x25   : > { %vm126_vm1 = vmand %vm124_vm15, %vm125_vm0 }
  0x26   : > { %vm127_vm2 = vmor %vm123_vm14, %vm126_vm1 }
  0x27   : > { %v128_v32 = vsel %vm127_vm2, %v120_v30, %v117_v28  ;;  %v129_v33 = vsel %vm127_vm2, %v121_v31, %v118_v29 }
  0x28   : > { %v131_v34 = vrot.slane %v128_v32, 2  ;;  %v132_v35 = vrot.slane %v129_v33, 2 }
  0x2a   : > { %vm134_vm3 = vcmp.gt.s32.totalorder %v131_v34, %v128_v32  ;;  %vm135_vm4 = vcmp.eq.s32.totalorder %v131_v34, %v128_v32  ;;  %vm136_vm5 = vcmp.lt.s32.totalorder %v132_v35, %v129_v33 }
  0x2b   : > { %vm137_vm6 = vmand %vm135_vm4, %vm136_vm5 }
  0x2c   : > { %vm138_vm7 = vmor %vm134_vm3, %vm137_vm6 }
  0x2d   : > { %v140_v36 = vsel %vm138_vm7, %v132_v35, %v129_v33  ;;  %v139_v37 = vsel %vm138_vm7, %v131_v34, %v128_v32 }
  0x2e   : > { %174 = vxpose.xlu1.b32.start [1/16] %v140_v36, 128  ;;  %142 = vxpose.xlu0.b32.start [1/16] %v139_v37, 128 }
  0x32   : > { %175 = vxpose.xlu1.b32.cont [2/16] %v140_v36, 128  ;;  %143 = vxpose.xlu0.b32.cont [2/16] %v139_v37, 128 }
  0x36   : > { %176 = vxpose.xlu1.b32.cont [3/16] %v140_v36, 128  ;;  %144 = vxpose.xlu0.b32.cont [3/16] %v139_v37, 128 }
  0x3a   : > { %177 = vxpose.xlu1.b32.cont [4/16] %v140_v36, 128  ;;  %145 = vxpose.xlu0.b32.cont [4/16] %v139_v37, 128 }
  0x3e   : > { %178 = vxpose.xlu1.b32.cont [5/16] %v140_v36, 128  ;;  %146 = vxpose.xlu0.b32.cont [5/16] %v139_v37, 128 }
  0x42   : > { %179 = vxpose.xlu1.b32.cont [6/16] %v140_v36, 128  ;;  %147 = vxpose.xlu0.b32.cont [6/16] %v139_v37, 128 }
  0x46   : > { %180 = vxpose.xlu1.b32.cont [7/16] %v140_v36, 128  ;;  %148 = vxpose.xlu0.b32.cont [7/16] %v139_v37, 128 }
  0x4a   : > { %181 = vxpose.xlu1.b32.cont [8/16] %v140_v36, 128  ;;  %149 = vxpose.xlu0.b32.cont [8/16] %v139_v37, 128 }
  0x4e   : > { %182 = vxpose.xlu1.b32.cont [9/16] %v140_v36, 128  ;;  %150 = vxpose.xlu0.b32.cont [9/16] %v139_v37, 128 }
  0x52   : > { %183 = vxpose.xlu1.b32.cont [10/16] %v140_v36, 128  ;;  %151 = vxpose.xlu0.b32.cont [10/16] %v139_v37, 128 }
  0x56   : > { %184 = vxpose.xlu1.b32.cont [11/16] %v140_v36, 128  ;;  %152 = vxpose.xlu0.b32.cont [11/16] %v139_v37, 128 }
  0x5a   : > { %185 = vxpose.xlu1.b32.cont [12/16] %v140_v36, 128  ;;  %153 = vxpose.xlu0.b32.cont [12/16] %v139_v37, 128 }
  0x5e   : > { %186 = vxpose.xlu1.b32.cont [13/16] %v140_v36, 128  ;;  %154 = vxpose.xlu0.b32.cont [13/16] %v139_v37, 128 }
  0x62   : > { %187 = vxpose.xlu1.b32.cont [14/16] %v140_v36, 128  ;;  %155 = vxpose.xlu0.b32.cont [14/16] %v139_v37, 128 }
  0x66   : > { %188 = vxpose.xlu1.b32.cont [15/16] %v140_v36, 128  ;;  %156 = vxpose.xlu0.b32.cont [15/16] %v139_v37, 128 }
  0x6a   : > { %189 = vxpose.xlu1.b32.end [16/16] %v140_v36, 128  ;;  %157 = vxpose.xlu0.b32.end [16/16] %v139_v37, 128 }
  0xae   : > { %v190_v38 = vpop.trf.xlu1  ;;  %v158_v39 = vpop.trf.xlu0 }
  0xb2   : > { %v191_v40 = vpop.trf.xlu1  ;;  %v159_v41 = vpop.trf.xlu0 }
  0xb3   : > { %vm210_vm8 = vcmp.lt.s32.totalorder %v191_v40, %v190_v38  ;;  %vm208_vm9 = vcmp.gt.s32.totalorder %v159_v41, %v158_v39  ;;  %vm209_vm10 = vcmp.eq.s32.totalorder %v159_v41, %v158_v39 }
  0xb4   : > { %vm211_vm11 = vmand %vm209_vm10, %vm210_vm8 }
  0xb5   : > { %vm212_vm12 = vmor %vm208_vm9, %vm211_vm11 }
  0xb6   : > { %v213_v42 = vsel %vm212_vm12, %v159_v41, %v158_v39  ;;  %v192_v43 = vpop.trf.xlu1  ;;  %v214_v44 = vsel %vm212_vm12, %v191_v40, %v190_v38  ;;  %v160_v45 = vpop.trf.xlu0 }
  0xb7   : > { %vm219_vm13 = vcmp.lt.s32.totalorder %v192_v43, %v214_v44  ;;  %vm217_vm14 = vcmp.gt.s32.totalorder %v160_v45, %v213_v42  ;;  %vm218_vm15 = vcmp.eq.s32.totalorder %v160_v45, %v213_v42 }
  0xb8   : > { %vm220_vm0 = vmand %vm218_vm15, %vm219_vm13 }
  0xb9   : > { %vm221_vm1 = vmor %vm217_vm14, %vm220_vm0 }
  0xba   : > { %v222_v46 = vsel %vm221_vm1, %v160_v45, %v213_v42  ;;  %v193_v47 = vpop.trf.xlu1  ;;  %v223_v48 = vsel %vm221_vm1, %v192_v43, %v214_v44  ;;  %v161_v49 = vpop.trf.xlu0 }
  0xbb   : > { %vm228_vm2 = vcmp.lt.s32.totalorder %v193_v47, %v223_v48  ;;  %vm226_vm3 = vcmp.gt.s32.totalorder %v161_v49, %v222_v46  ;;  %vm227_vm4 = vcmp.eq.s32.totalorder %v161_v49, %v222_v46 }
  0xbc   : > { %vm229_vm5 = vmand %vm227_vm4, %vm228_vm2 }
  0xbd   : > { %vm230_vm6 = vmor %vm226_vm3, %vm229_vm5 }
  0xbe   : > { %v231_v50 = vsel %vm230_vm6, %v161_v49, %v222_v46  ;;  %v194_v51 = vpop.trf.xlu1  ;;  %v232_v52 = vsel %vm230_vm6, %v193_v47, %v223_v48  ;;  %v162_v53 = vpop.trf.xlu0 }
  0xbf   : > { %vm237_vm7 = vcmp.lt.s32.totalorder %v194_v51, %v232_v52  ;;  %vm235_vm8 = vcmp.gt.s32.totalorder %v162_v53, %v231_v50  ;;  %vm236_vm9 = vcmp.eq.s32.totalorder %v162_v53, %v231_v50 }
  0xc0   : > { %vm238_vm10 = vmand %vm236_vm9, %vm237_vm7 }
  0xc1   : > { %vm239_vm11 = vmor %vm235_vm8, %vm238_vm10 }
  0xc2   : > { %v240_v54 = vsel %vm239_vm11, %v162_v53, %v231_v50  ;;  %v195_v55 = vpop.trf.xlu1  ;;  %v241_v56 = vsel %vm239_vm11, %v194_v51, %v232_v52  ;;  %v163_v57 = vpop.trf.xlu0 }
  0xc3   : > { %vm246_vm12 = vcmp.lt.s32.totalorder %v195_v55, %v241_v56  ;;  %vm244_vm13 = vcmp.gt.s32.totalorder %v163_v57, %v240_v54  ;;  %vm245_vm14 = vcmp.eq.s32.totalorder %v163_v57, %v240_v54 }
  0xc4   : > { %vm247_vm15 = vmand %vm245_vm14, %vm246_vm12 }
  0xc5   : > { %vm248_vm0 = vmor %vm244_vm13, %vm247_vm15 }
  0xc6   : > { %v249_v58 = vsel %vm248_vm0, %v163_v57, %v240_v54  ;;  %v196_v59 = vpop.trf.xlu1  ;;  %v250_v60 = vsel %vm248_vm0, %v195_v55, %v241_v56  ;;  %v164_v61 = vpop.trf.xlu0 }
  0xc7   : > { %vm255_vm1 = vcmp.lt.s32.totalorder %v196_v59, %v250_v60  ;;  %vm253_vm2 = vcmp.gt.s32.totalorder %v164_v61, %v249_v58  ;;  %vm254_vm3 = vcmp.eq.s32.totalorder %v164_v61, %v249_v58 }
  0xc8   : > { %vm256_vm4 = vmand %vm254_vm3, %vm255_vm1 }
  0xc9   : > { %vm257_vm5 = vmor %vm253_vm2, %vm256_vm4 }
  0xca   : > { %v258_v62 = vsel %vm257_vm5, %v164_v61, %v249_v58  ;;  %v197_v63 = vpop.trf.xlu1  ;;  %v259_v0 = vsel %vm257_vm5, %v196_v59, %v250_v60  ;;  %v165_v1 = vpop.trf.xlu0 }
  0xcb   : > { %vm264_vm6 = vcmp.lt.s32.totalorder %v197_v63, %v259_v0  ;;  %vm262_vm7 = vcmp.gt.s32.totalorder %v165_v1, %v258_v62  ;;  %vm263_vm8 = vcmp.eq.s32.totalorder %v165_v1, %v258_v62 }
  0xcc   : > { %vm265_vm9 = vmand %vm263_vm8, %vm264_vm6 }
  0xcd   : > { %vm266_vm10 = vmor %vm262_vm7, %vm265_vm9 }
  0xce   : > { %v267_v2 = vsel %vm266_vm10, %v165_v1, %v258_v62  ;;  %v198_v4 = vpop.trf.xlu1  ;;  %v268_v5 = vsel %vm266_vm10, %v197_v63, %v259_v0  ;;  %v166_v6 = vpop.trf.xlu0 }
  0xcf   : > { %vm273_vm11 = vcmp.lt.s32.totalorder %v198_v4, %v268_v5  ;;  %vm271_vm12 = vcmp.gt.s32.totalorder %v166_v6, %v267_v2  ;;  %vm272_vm13 = vcmp.eq.s32.totalorder %v166_v6, %v267_v2 }
  0xd0   : > { %vm274_vm14 = vmand %vm272_vm13, %vm273_vm11 }
  0xd1   : > { %vm275_vm15 = vmor %vm271_vm12, %vm274_vm14 }
  0xd2   : > { %v276_v8 = vsel %vm275_vm15, %v166_v6, %v267_v2  ;;  %v199_v9 = vpop.trf.xlu1  ;;  %v277_v10 = vsel %vm275_vm15, %v198_v4, %v268_v5  ;;  %v167_v11 = vpop.trf.xlu0  ;;  %v1090_v6 = vmov 2147483648  }
  0xd3   : > { %vm282_vm0 = vcmp.lt.s32.totalorder %v199_v9, %v277_v10  ;;  %vm280_vm1 = vcmp.gt.s32.totalorder %v167_v11, %v276_v8  ;;  %vm281_vm2 = vcmp.eq.s32.totalorder %v167_v11, %v276_v8 }
  0xd4   : > { %vm283_vm3 = vmand %vm281_vm2, %vm282_vm0 }
  0xd5   : > { %vm284_vm4 = vmor %vm280_vm1, %vm283_vm3 }
  0xd6   : > { %v285_v12 = vsel %vm284_vm4, %v167_v11, %v276_v8  ;;  %v200_v13 = vpop.trf.xlu1  ;;  %v286_v14 = vsel %vm284_vm4, %v199_v9, %v277_v10  ;;  %v168_v15 = vpop.trf.xlu0  ;;  %v1091_v8 = vmov 2147483647  }
  0xd7   : > { %vm291_vm5 = vcmp.lt.s32.totalorder %v200_v13, %v286_v14  ;;  %vm289_vm6 = vcmp.gt.s32.totalorder %v168_v15, %v285_v12  ;;  %vm290_vm7 = vcmp.eq.s32.totalorder %v168_v15, %v285_v12 }
  0xd8   : > { %vm292_vm8 = vmand %vm290_vm7, %vm291_vm5 }
  0xd9   : > { %vm293_vm9 = vmor %vm289_vm6, %vm292_vm8 }
  0xda   : > { %v294_v16 = vsel %vm293_vm9, %v168_v15, %v285_v12  ;;  %v201_v17 = vpop.trf.xlu1  ;;  %v295_v18 = vsel %vm293_vm9, %v200_v13, %v286_v14  ;;  %v169_v19 = vpop.trf.xlu0  ;;  %v517_v13 = vld [vmem:[#allocation12] sm:$0xff] (%p89_p2)  ;;  %v518_v14 = vld [vmem:[#allocation14] sm:$0xff] (%p89_p2)  ;;  %v1092_v15 = vmov (%p89_p2), 839939668  }
  0xdb   : > { %vm300_vm10 = vcmp.lt.s32.totalorder %v201_v17, %v295_v18  ;;  %vm298_vm11 = vcmp.gt.s32.totalorder %v169_v19, %v294_v16  ;;  %vm299_vm12 = vcmp.eq.s32.totalorder %v169_v19, %v294_v16 }
  0xdc   : > { %vm301_vm13 = vmand %vm299_vm12, %vm300_vm10 }
  0xdd   : > { %vm302_vm14 = vmor %vm298_vm11, %vm301_vm13 }
  0xde   : > { %v303_v20 = vsel %vm302_vm14, %v169_v19, %v294_v16  ;;  %v202_v21 = vpop.trf.xlu1  ;;  %v304_v22 = vsel %vm302_vm14, %v201_v17, %v295_v18  ;;  %v170_v23 = vpop.trf.xlu0  ;;  %v542_v16 = vunpack.c.l.s4 (%p89_p2), %v1092_v15  ;;  %v1093_v17 = vmov (%p89_p2), 1417023538  }
  0xdf   : > { %vm309_vm15 = vcmp.lt.s32.totalorder %v202_v21, %v304_v22  ;;  %vm307_vm0 = vcmp.gt.s32.totalorder %v170_v23, %v303_v20  ;;  %vm308_vm1 = vcmp.eq.s32.totalorder %v170_v23, %v303_v20  ;;  %v570_v18 = vunpack.c.l.s4 (%p89_p2), %v1093_v17 }
  0xe0   : > { %vm310_vm2 = vmand %vm308_vm1, %vm309_vm15  ;;  %v543_v19 = vunpack.c.0.s8 (%p89_p2), %v542_v16 }
  0xe1   : > { %vm311_vm3 = vmor %vm307_vm0, %vm310_vm2 }
  0xe2   : > { %v312_v24 = vsel %vm311_vm3, %v170_v23, %v303_v20  ;;  %v203_v25 = vpop.trf.xlu1  ;;  %v313_v26 = vsel %vm311_vm3, %v202_v21, %v304_v22  ;;  %v171_v27 = vpop.trf.xlu0  ;;  %v563_v23 = vand.u32 (%p89_p2), 4, %v1118_v7 }
  0xe3   : > { %vm318_vm4 = vcmp.lt.s32.totalorder %v203_v25, %v313_v26  ;;  %vm316_vm5 = vcmp.gt.s32.totalorder %v171_v27, %v312_v24  ;;  %vm317_vm6 = vcmp.eq.s32.totalorder %v171_v27, %v312_v24 }
  0xe4   : > { %vm319_vm7 = vmand %vm317_vm6, %vm318_vm4 }
  0xe5   : > { %vm320_vm8 = vmor %vm316_vm5, %vm319_vm7 }
  0xe6   : > { %v321_v28 = vsel %vm320_vm8, %v171_v27, %v312_v24  ;;  %v204_v29 = vpop.trf.xlu1  ;;  %v322_v30 = vsel %vm320_vm8, %v203_v25, %v313_v26  ;;  %v172_v31 = vpop.trf.xlu0  ;;  %v571_v25 = vunpack.c.0.s8 (%p89_p2), %v570_v18 }
  0xe7   : > { %vm327_vm9 = vcmp.lt.s32.totalorder %v204_v29, %v322_v30  ;;  %vm325_vm10 = vcmp.gt.s32.totalorder %v172_v31, %v321_v28  ;;  %vm326_vm11 = vcmp.eq.s32.totalorder %v172_v31, %v321_v28 }
  0xe8   : > { %vm328_vm12 = vmand %vm326_vm11, %vm327_vm9 }
  0xe9   : > { %vm329_vm13 = vmor %vm325_vm10, %vm328_vm12 }
  0xea   : > { %v330_v32 = vsel %vm329_vm13, %v172_v31, %v321_v28  ;;  %v205_v33 = vpop.trf.xlu1  ;;  %v331_v34 = vsel %vm329_vm13, %v204_v29, %v322_v30  ;;  %v173_v35 = vpop.trf.xlu0  ;;  %v1094_v31 = vmov (%p89_p2), 1732584193  }
  0xeb   : > { %vm336_vm14 = vcmp.lt.s32.totalorder %v205_v33, %v331_v34  ;;  %vm334_vm15 = vcmp.gt.s32.totalorder %v173_v35, %v330_v32  ;;  %vm335_vm0 = vcmp.eq.s32.totalorder %v173_v35, %v330_v32 }
  0xec   : > { %vm337_vm1 = vmand %vm335_vm0, %vm336_vm14 }
  0xed   : > { %vm338_vm2 = vmor %vm334_vm15, %vm337_vm1 }
  0xee   : > { %v339_v36 = vsel %vm338_vm2, %v173_v35, %v330_v32  ;;  %v340_v37 = vsel %vm338_vm2, %v205_v33, %v331_v34  ;;  %v598_v32 = vunpack.c.l.s4 (%p89_p2), %v1094_v31  ;;  %v1147_v33 = vsub.s32 (%p89_p2), %v571_v25, %v1118_v7 }
  0xef   : > { %v342_v38 = vrot.slane %v339_v36, 1  ;;  %v343_v39 = vrot.slane %v340_v37, 1  ;;  %v591_v34 = vand.u32 (%p89_p2), 2, %v1118_v7 }
  0xf1   : > { %vm345_vm3 = vcmp.gt.s32.totalorder %v342_v38, %v339_v36  ;;  %vm346_vm4 = vcmp.eq.s32.totalorder %v342_v38, %v339_v36  ;;  %vm347_vm5 = vcmp.lt.s32.totalorder %v343_v39, %v340_v37 }
  0xf2   : > { %vm348_vm6 = vmand %vm346_vm4, %vm347_vm5 }
  0xf3   : > { %vm349_vm7 = vmor %vm345_vm3, %vm348_vm6 }
  0xf4   : > { %v350_v40 = vsel %vm349_vm7, %v342_v38, %v339_v36  ;;  %v351_v41 = vsel %vm349_vm7, %v343_v39, %v340_v37  ;;  %v599_v37 = vunpack.c.0.s8 (%p89_p2), %v598_v32 }
  0xf5   : > { %v353_v42 = vrot.slane %v350_v40, 1  ;;  %v354_v43 = vrot.slane %v351_v41, 1 }
  0xf7   : > { %vm356_vm8 = vcmp.gt.s32.totalorder %v353_v42, %v350_v40  ;;  %vm357_vm9 = vcmp.eq.s32.totalorder %v353_v42, %v350_v40  ;;  %vm358_vm10 = vcmp.lt.s32.totalorder %v354_v43, %v351_v41 }
  0xf8   : > { %vm359_vm11 = vmand %vm357_vm9, %vm358_vm10 }
  0xf9   : > { %vm360_vm12 = vmor %vm356_vm8, %vm359_vm11 }
  0xfa   : > { %v361_v44 = vsel %vm360_vm12, %v353_v42, %v350_v40  ;;  %v362_v45 = vsel %vm360_vm12, %v354_v43, %v351_v41  ;;  %v1161_v42 = vsub.s32 (%p89_p2), %v599_v37, %v1118_v7 }
  0xfb   : > { %v364_v46 = vrot.slane %v361_v44, 1  ;;  %v365_v47 = vrot.slane %v362_v45, 1 }
  0xfd   : > { %vm369_vm13 = vcmp.lt.s32.totalorder %v365_v47, %v362_v45  ;;  %vm367_vm14 = vcmp.gt.s32.totalorder %v364_v46, %v361_v44  ;;  %vm368_vm15 = vcmp.eq.s32.totalorder %v364_v46, %v361_v44 }
  0xfe   : > { %vm370_vm0 = vmand %vm368_vm15, %vm369_vm13 }
  0xff   : > { %vm371_vm1 = vmor %vm367_vm14, %vm370_vm0 }
 0x100   : > { %v372_v48 = vsel %vm371_vm1, %v364_v46, %v361_v44  ;;  %v373_v49 = vsel %vm371_vm1, %v365_v47, %v362_v45  ;;  %v619_v46 = vand.u32 (%p89_p2), 1, %v1118_v7 }
 0x101   : > { %v375_v50 = vrot.slane %v372_v48, 1  ;;  %v376_v51 = vrot.slane %v373_v49, 1 }
 0x103   : > { %vm378_vm2 = vcmp.gt.s32.totalorder %v375_v50, %v372_v48  ;;  %vm379_vm3 = vcmp.eq.s32.totalorder %v375_v50, %v372_v48  ;;  %vm380_vm4 = vcmp.lt.s32.totalorder %v376_v51, %v373_v49 }
 0x104   : > { %vm381_vm5 = vmand %vm379_vm3, %vm380_vm4 }
 0x105   : > { %vm382_vm6 = vmor %vm378_vm2, %vm381_vm5 }
 0x106   : > { %v383_v52 = vsel %vm382_vm6, %v375_v50, %v372_v48  ;;  %v384_v53 = vsel %vm382_vm6, %v376_v51, %v373_v49 }
 0x107   : > { %v386_v54 = vrot.slane %v383_v52, 1  ;;  %v387_v55 = vrot.slane %v384_v53, 1 }
 0x109   : > { %vm389_vm7 = vcmp.gt.s32.totalorder %v386_v54, %v383_v52  ;;  %vm390_vm8 = vcmp.eq.s32.totalorder %v386_v54, %v383_v52  ;;  %vm391_vm9 = vcmp.lt.s32.totalorder %v387_v55, %v384_v53 }
 0x10a   : > { %vm392_vm10 = vmand %vm390_vm8, %vm391_vm9 }
 0x10b   : > { %vm393_vm11 = vmor %vm389_vm7, %vm392_vm10 }
 0x10c   : > { %v394_v56 = vsel %vm393_vm11, %v386_v54, %v383_v52  ;;  %v395_v57 = vsel %vm393_vm11, %v387_v55, %v384_v53 }
 0x10d   : > { %v397_v58 = vrot.slane %v394_v56, 1  ;;  %v398_v59 = vrot.slane %v395_v57, 1 }
 0x10f   : > { %vm400_vm12 = vcmp.gt.s32.totalorder %v397_v58, %v394_v56  ;;  %vm401_vm13 = vcmp.eq.s32.totalorder %v397_v58, %v394_v56  ;;  %vm402_vm14 = vcmp.lt.s32.totalorder %v398_v59, %v395_v57 }
 0x110   : > { %vm403_vm15 = vmand %vm401_vm13, %vm402_vm14  ;;  %vm1141_vm13 = vcmp.ne.s32.totalorder (%p89_p2), %v563_v23, 0 }
 0x111   : > { %vm404_vm0 = vmor %vm400_vm12, %vm403_vm15 }
 0x112   : > { %v405_v60 = vsel %vm404_vm0, %v397_v58, %v394_v56  ;;  %v406_v61 = vsel %vm404_vm0, %v398_v59, %v395_v57 }
 0x113   : > { %v408_v62 = vrot.slane %v405_v60, 1  ;;  %v409_v63 = vrot.slane %v406_v61, 1 }
 0x115   : > { %vm411_vm1 = vcmp.gt.s32.totalorder %v408_v62, %v405_v60  ;;  %vm412_vm2 = vcmp.eq.s32.totalorder %v408_v62, %v405_v60  ;;  %vm413_vm3 = vcmp.lt.s32.totalorder %v409_v63, %v406_v61 }
 0x116   : > { %vm414_vm4 = vmand %vm412_vm2, %vm413_vm3 }
 0x117   : > { %vm415_vm5 = vmor %vm411_vm1, %vm414_vm4 }
 0x118   : > { %v417_v0 = vsel %vm415_vm5, %v409_v63, %v406_v61  ;;  %v416_v1 = vsel %vm415_vm5, %v408_v62, %v405_v60 }
 0x119   : > { %424 = vxpose.xlu0.b32.start.end [1/1] (short) (narrow) %v417_v0, 8  ;;  %420 = vst [vmem:[%s419_s13] sm:$0x1] %v416_v1  ;;  %422 = vst [vmem:[%s421_s14] sm:$0x1] %v417_v0  ;;  %s958_s13 = sshll.u32 (%p89_p2), %s1095_s0, 4  ;;  %s959_s13 = int_to_ptr.vmem [resolvable:$true] %s958_s13 }
 0x11a   :  { %s1054_s14 = scalar_lea.vmem (%p89_p2), %s959_s13, 32  ;;  %p1059_p4 = scmp.lt.s32.totalorder (%p89_p2), %s959_s13, %s959_s13 }
 0x11b   :  { %p1055_p3 = scmp.ne.s32.totalorder (%p89_p2), %s959_s13, %s1054_s14  ;;  %p1060_p5 = scmp.lt.s32.totalorder (%p89_p2), %s1054_s14, %s1054_s14 }
 0x11d   :  { %p1061_p6 = por (%p89_p2), %p1060_p5, %p1059_p4 }
 0x11f   :  { %p1062_p7 = pnand (%p89_p2), %p1061_p6, %p1055_p3 }
 0x120   :  { %v505_v11 = vld [vmem:[#allocation13 + $0x7] ss:$-1 sm:$0xff] (%p89_p2)  ;;  %v511_v12 = vld [vmem:[#allocation15 + $0x7] ss:$-1 sm:$0xff] (%p89_p2) }
 0x121   :  { %vm523_vm8 = vcmp.gt.s32.totalorder (%p89_p2), %v517_v13, %v505_v11  ;;  %vm524_vm9 = vcmp.eq.s32.totalorder (%p89_p2), %v517_v13, %v505_v11  ;;  %vm525_vm10 = vcmp.lt.s32.totalorder (%p89_p2), %v518_v14, %v511_v12 }
 0x122   :  { %vm526_vm11 = vmand (%p89_p2), %vm524_vm9, %vm525_vm10  ;;  %vm1154_vm9 = vcmp.ne.s32.totalorder (%p89_p2), %v591_v34, 0 }
 0x123   :  { %vm527_vm12 = vmor (%p89_p2), %vm523_vm8, %vm526_vm11 }
 0x124   :  { %v528_v20 = vsel (%p89_p2), %vm527_vm12, %v517_v13, %v505_v11  ;;  %v530_v21 = vsel (%p89_p2), %vm527_vm12, %v505_v11, %v517_v13  ;;  %v532_v22 = vsel (%p89_p2), %vm527_vm12, %v518_v14, %v511_v12  ;;  %v534_v24 = vsel (%p89_p2), %vm527_vm12, %v511_v12, %v518_v14 }
 0x199   : > { %v440_v2 = vpop.trf.xlu0 }
 0x19a   : > { %v479_v4 = vrot.slane %v440_v2, 1  ;;  %1031 = vpush %v440_v2 }
 0x19c   : > { %1033 = vpush %v479_v4 }
 0x1cb   : > { %s1032_s15 = spop %1031 }
 0x1cc   : > { %s457_s16 = sshrl.u32 %s1032_s15, 9  ;;  %s459_s17 = ssub.s32 0, %s1032_s15 }
 0x1cd   : > { %p458_p0 = scmp.lt.s32.totalorder %s1032_s15, 0  ;;  %s1023_s18 = smin.u32 %s1032_s15, %s459_s17 }
 0x1ce   : > { %s461_s19 = sand.u32 511, %s1023_s18   ;;  %s1025_s20 = sshll.u32 %s457_s16, 3 }
 0x1cf   : > { %s462_s21 = ssub.s32 0, %s461_s19  ;;  %s1034_s22 = spop %1033 }
 0x1d0   : > { %s1231_s21 = smov (!%p458_p0, %s462_s21), %s461_s19  ;;  %s483_s26 = ssub.s32 0, %s1034_s22 }
 0x1d1   : > { %s464_s23 = sshrl.u32 %s1231_s21, 7  ;;  %s466_s24 = sand.u32 127, %s1231_s21  }
 0x1d2   : > { %s1024_s25 = sshll.u32 %s464_s23, 8  ;;  %s1027_s28 = smin.u32 %s1034_s22, %s483_s26 }
 0x1d3   : > { %s467_s27 = sadd.s32 %s1024_s25, %s466_s24  ;;  %p482_p1 = scmp.lt.s32.totalorder %s1034_s22, 0 }
 0x1d4   : > { %v469_v5 = vstv %s467_s27  ;;  %s485_s29 = sand.u32 511, %s1027_s28   ;;  %s473_s3 = scalar_lea.vmem [#allocation16], %s1025_s20 }
 0x1d5   : > { %vm471_vm6 = vcmp.eq.s32.totalorder %v43_v3, %v469_v5  ;;  %s486_s30 = ssub.s32 0, %s485_s29  ;;  %s476_s4 = scalar_lea.vmem [#allocation17], %s1025_s20 }
 0x1d6   : > { %474 = vst.msk [vmem:[%s473_s3] sm:$0xff] %vm471_vm6, %v1090_v6  ;;  %477 = vst.msk [vmem:[%s476_s4] sm:$0xff] %vm471_vm6, %v1091_v8  ;;  %s1233_s30 = smov (!%p482_p1, %s486_s30), %s485_s29  ;;  %s481_s5 = sshrl.u32 %s1034_s22, 9 }
 0x1d7   : > { %s488_s6 = sshrl.u32 %s1233_s30, 7  ;;  %s490_s7 = sand.u32 127, %s1233_s30  }
 0x1d8   : > { %s1028_s8 = sshll.u32 %s488_s6, 8  ;;  %s1029_s10 = sshll.u32 %s481_s5, 3 }
 0x1d9   : > { %s491_s9 = sadd.s32 %s1028_s8, %s490_s7  ;;  %s497_s11 = scalar_lea.vmem [#allocation16], %s1029_s10 }
 0x1da   : > { %v493_v9 = vstv %s491_s9  ;;  %s500_s12 = scalar_lea.vmem [#allocation17], %s1029_s10  ;;  %91 = sbr.rel (!%p89_p2) target bundleno = 17 (0x11), region = 107 }
 0x1db   : > { %v494_v10 = vadd.s32 128, %v493_v9 }
 0x1dd   : > { %vm495_vm7 = vcmp.eq.s32.totalorder %v43_v3, %v494_v10  ;;  %v1136_v3 = vsub.s32 (%p89_p2), %v543_v19, %v1118_v7 }
 0x1de   : > { %498 = vst.msk [vmem:[%s497_s11] sm:$0xff] %vm495_vm7, %v1090_v6  ;;  %501 = vst.msk [vmem:[%s500_s12] sm:$0xff] %vm495_vm7, %v1091_v8 }
 0x1df   :  { %v547_v26 = vrot.slane (%p89_p2), %v528_v20, %v1136_v3  ;;  %v554_v27 = vrot.slane (%p89_p2), %v532_v22, %v1136_v3  ;;  %v728_v28 = vrot.slane (%p89_p2), %v530_v21, %v1136_v3  ;;  %v735_v30 = vrot.slane (%p89_p2), %v534_v24, %v1136_v3 }
 0x1e1   :  { %vm556_vm14 = vcmp.gt.s32.totalorder %v528_v20, %v547_v26  ;;  %vm557_vm15 = vcmp.eq.s32.totalorder %v528_v20, %v547_v26  ;;  %vm558_vm0 = vcmp.lt.s32.totalorder %v532_v22, %v554_v27  ;;  %vm738_vm2 = vcmp.eq.s32.totalorder %v530_v21, %v728_v28 }
 0x1e2   :  { %vm559_vm1 = vmand %vm557_vm15, %vm558_vm0  ;;  %vm739_vm3 = vcmp.lt.s32.totalorder %v534_v24, %v735_v30  ;;  %vm737_vm5 = vcmp.gt.s32.totalorder %v530_v21, %v728_v28 }
 0x1e3   :  { %vm560_vm4 = vmor %vm556_vm14, %vm559_vm1 }
 0x1e4   :  { %vm565_vm6 = vmxor %vm560_vm4, %vm1141_vm13 }
 0x1e5   :  { %v566_v35 = vsel %vm565_vm6, %v528_v20, %v547_v26  ;;  %v567_v36 = vsel %vm565_vm6, %v532_v22, %v554_v27  ;;  %vm740_vm7 = vmand %vm738_vm2, %vm739_vm3 }
 0x1e6   :  { %v575_v38 = vrot.slane %v566_v35, %v1147_v33  ;;  %v582_v39 = vrot.slane %v567_v36, %v1147_v33  ;;  %vm741_vm8 = vmor %vm737_vm5, %vm740_vm7 }
 0x1e7   :  { %vm746_vm10 = vmxor %vm741_vm8, %vm1141_vm13 }
 0x1e8   :  { %vm584_vm11 = vcmp.gt.s32.totalorder %v566_v35, %v575_v38  ;;  %vm585_vm12 = vcmp.eq.s32.totalorder %v566_v35, %v575_v38  ;;  %vm586_vm14 = vcmp.lt.s32.totalorder %v567_v36, %v582_v39  ;;  %v747_v41 = vsel %vm746_vm10, %v530_v21, %v728_v28 }
 0x1e9   :  { %vm587_vm15 = vmand %vm585_vm12, %vm586_vm14  ;;  %v748_v43 = vsel %vm746_vm10, %v534_v24, %v735_v30  ;;  %v756_v44 = vrot.slane %v747_v41, %v1147_v33 }
 0x1ea   :  { %vm588_vm0 = vmor %vm584_vm11, %vm587_vm15  ;;  %v763_v45 = vrot.slane %v748_v43, %v1147_v33  ;;  %vm1170_vm11 = vcmp.ne.s32.totalorder %v619_v46, 0 }
 0x1eb   :  { %vm593_vm1 = vmxor %vm588_vm0, %vm1154_vm9  ;;  %vm765_vm2 = vcmp.gt.s32.totalorder %v747_v41, %v756_v44  ;;  %vm766_vm3 = vcmp.eq.s32.totalorder %v747_v41, %v756_v44 }
 0x1ec   :  { %v594_v47 = vsel %vm593_vm1, %v566_v35, %v575_v38  ;;  %v595_v48 = vsel %vm593_vm1, %v567_v36, %v582_v39  ;;  %vm767_vm4 = vcmp.lt.s32.totalorder %v748_v43, %v763_v45 }
 0x1ed   :  { %v603_v49 = vrot.slane %v594_v47, %v1161_v42  ;;  %v610_v50 = vrot.slane %v595_v48, %v1161_v42  ;;  %vm768_vm5 = vmand %vm766_vm3, %vm767_vm4 }
 0x1ee   :  { %vm769_vm6 = vmor %vm765_vm2, %vm768_vm5 }
 0x1ef   :  { %vm612_vm7 = vcmp.gt.s32.totalorder %v594_v47, %v603_v49  ;;  %vm613_vm8 = vcmp.eq.s32.totalorder %v594_v47, %v603_v49  ;;  %vm614_vm10 = vcmp.lt.s32.totalorder %v595_v48, %v610_v50  ;;  %vm774_vm12 = vmxor %vm769_vm6, %vm1154_vm9 }
 0x1f0   :  { %vm615_vm14 = vmand %vm613_vm8, %vm614_vm10  ;;  %v775_v7 = vsel %vm774_vm12, %v747_v41, %v756_v44  ;;  %v776_v52 = vsel %vm774_vm12, %v748_v43, %v763_v45 }
 0x1f1   :  { %vm616_vm15 = vmor %vm612_vm7, %vm615_vm14  ;;  %v784_v53 = vrot.slane %v775_v7, %v1161_v42  ;;  %v791_v54 = vrot.slane %v776_v52, %v1161_v42 }
 0x1f2   :  { %vm621_vm0 = vmxor %vm616_vm15, %vm1170_vm11 }
 0x1f3   :  { %v622_v55 = vsel %vm621_vm0, %v594_v47, %v603_v49  ;;  %v623_v56 = vsel %vm621_vm0, %v595_v48, %v610_v50  ;;  %vm793_vm1 = vcmp.gt.s32.totalorder %v775_v7, %v784_v53  ;;  %vm794_vm2 = vcmp.eq.s32.totalorder %v775_v7, %v784_v53 }
 0x1f4   :  { %v637_v57 = vrot.slane %v622_v55, %v1136_v3  ;;  %v644_v58 = vrot.slane %v623_v56, %v1136_v3  ;;  %vm795_vm3 = vcmp.lt.s32.totalorder %v776_v52, %v791_v54 }
 0x1f5   :  { %vm796_vm4 = vmand %vm794_vm2, %vm795_vm3 }
 0x1f6   :  { %vm646_vm5 = vcmp.gt.s32.totalorder %v622_v55, %v637_v57  ;;  %vm647_vm6 = vcmp.eq.s32.totalorder %v622_v55, %v637_v57  ;;  %vm648_vm7 = vcmp.lt.s32.totalorder %v623_v56, %v644_v58  ;;  %vm797_vm8 = vmor %vm793_vm1, %vm796_vm4 }
 0x1f7   :  { %vm649_vm10 = vmand %vm647_vm6, %vm648_vm7 }
 0x1f8   :  { %vm650_vm12 = vmor %vm646_vm5, %vm649_vm10 }
 0x1f9   :  { %vm655_vm14 = vmxor %vm650_vm12, %vm1141_vm13 }
 0x1fa   :  { %v656_v59 = vsel %vm655_vm14, %v622_v55, %v637_v57  ;;  %v657_v60 = vsel %vm655_vm14, %v623_v56, %v644_v58  ;;  %vm802_vm15 = vmxor %vm797_vm8, %vm1170_vm11 }
 0x1fb   :  { %v665_v61 = vrot.slane %v656_v59, %v1147_v33  ;;  %v672_v62 = vrot.slane %v657_v60, %v1147_v33  ;;  %v803_v63 = vsel %vm802_vm15, %v775_v7, %v784_v53  ;;  %v804_v0 = vsel %vm802_vm15, %v776_v52, %v791_v54 }
 0x1fc   :  { %v818_v1 = vrot.slane %v803_v63, %v1136_v3  ;;  %v825_v2 = vrot.slane %v804_v0, %v1136_v3 }
 0x1fd   :  { %vm674_vm0 = vcmp.gt.s32.totalorder %v656_v59, %v665_v61  ;;  %vm675_vm1 = vcmp.eq.s32.totalorder %v656_v59, %v665_v61  ;;  %vm676_vm2 = vcmp.lt.s32.totalorder %v657_v60, %v672_v62 }
 0x1fe   :  { %vm677_vm3 = vmand %vm675_vm1, %vm676_vm2  ;;  %vm828_vm4 = vcmp.eq.s32.totalorder %v803_v63, %v818_v1  ;;  %vm829_vm5 = vcmp.lt.s32.totalorder %v804_v0, %v825_v2  ;;  %vm827_vm7 = vcmp.gt.s32.totalorder %v803_v63, %v818_v1 }
 0x1ff   :  { %vm678_vm6 = vmor %vm674_vm0, %vm677_vm3 }
 0x200   :  { %vm683_vm8 = vmxor %vm678_vm6, %vm1154_vm9 }
 0x201   :  { %v684_v4 = vsel %vm683_vm8, %v656_v59, %v665_v61  ;;  %v685_v5 = vsel %vm683_vm8, %v657_v60, %v672_v62  ;;  %vm830_vm10 = vmand %vm828_vm4, %vm829_vm5 }
 0x202   :  { %v693_v6 = vrot.slane %v684_v4, %v1161_v42  ;;  %v700_v8 = vrot.slane %v685_v5, %v1161_v42  ;;  %vm831_vm12 = vmor %vm827_vm7, %vm830_vm10 }
 0x203   :  { %vm836_vm14 = vmxor %vm831_vm12, %vm1141_vm13 }
 0x204   :  { %vm702_vm15 = vcmp.gt.s32.totalorder %v684_v4, %v693_v6  ;;  %vm703_vm1 = vcmp.eq.s32.totalorder %v684_v4, %v693_v6  ;;  %vm704_vm2 = vcmp.lt.s32.totalorder %v685_v5, %v700_v8  ;;  %v837_v9 = vsel %vm836_vm14, %v803_v63, %v818_v1 }
 0x205   :  { %vm705_vm0 = vmand %vm703_vm1, %vm704_vm2  ;;  %v838_v10 = vsel %vm836_vm14, %v804_v0, %v825_v2  ;;  %v846_v11 = vrot.slane %v837_v9, %v1147_v33 }
 0x206   :  { %vm706_vm3 = vmor %vm702_vm15, %vm705_vm0  ;;  %v853_v12 = vrot.slane %v838_v10, %v1147_v33 }
 0x207   :  { %vm711_vm4 = vmxor %vm706_vm3, %vm1170_vm11  ;;  %vm855_vm5 = vcmp.gt.s32.totalorder %v837_v9, %v846_v11  ;;  %vm856_vm6 = vcmp.eq.s32.totalorder %v837_v9, %v846_v11 }
 0x208   :  { %v712_v13 = vsel %vm711_vm4, %v684_v4, %v693_v6  ;;  %v713_v14 = vsel %vm711_vm4, %v685_v5, %v700_v8  ;;  %vm857_vm7 = vcmp.lt.s32.totalorder %v838_v10, %v853_v12 }
 0x209   :  { %715 = vst [vmem:[#allocation12] sm:$0xff] %v712_v13  ;;  %716 = vst [vmem:[#allocation14] sm:$0xff] %v713_v14 }
 0x20a   :  { %vm858_vm13 = vmand %vm856_vm6, %vm857_vm7 }
 0x20b   :  { %vm859_vm8 = vmor %vm855_vm5, %vm858_vm13 }
 0x20c   :  { %vm864_vm10 = vmxor %vm859_vm8, %vm1154_vm9 }
 0x20d   :  { %v865_v15 = vsel %vm864_vm10, %v837_v9, %v846_v11  ;;  %v866_v16 = vsel %vm864_vm10, %v838_v10, %v853_v12 }
 0x20e   :  { %v874_v17 = vrot.slane %v865_v15, %v1161_v42  ;;  %v881_v18 = vrot.slane %v866_v16, %v1161_v42 }
 0x210   :  { %vm883_vm12 = vcmp.gt.s32.totalorder %v865_v15, %v874_v17  ;;  %vm884_vm14 = vcmp.eq.s32.totalorder %v865_v15, %v874_v17  ;;  %vm885_vm15 = vcmp.lt.s32.totalorder %v866_v16, %v881_v18  ;;  %v923_v21 = vld [vmem:[#allocation14] sm:$0xff]  ;;  %v899_v22 = vld [vmem:[#allocation12] sm:$0xff] }
 0x211   :  { %vm886_vm1 = vmand %vm884_vm14, %vm885_vm15  ;;  %924 = vxpose.xlu0.b32.start.end [1/1] (short) (narrow) %v923_v21, 8  ;;  %vm900_vm9 = vcmp.lt.s32.totalorder %v899_v22, 0  ;;  %v901_v23 = vsub.s32 2147483647, %v899_v22 }
 0x212   :  { %vm887_vm2 = vmor %vm883_vm12, %vm886_vm1 }
 0x213   :  { %vm892_vm0 = vmxor %vm887_vm2, %vm1170_vm11  ;;  %v902_v24 = vsel %vm900_vm9, %v901_v23, %v899_v22 }
 0x214   :  { %v893_v19 = vsel %vm892_vm0, %v865_v15, %v874_v17  ;;  %v894_v20 = vsel %vm892_vm0, %v866_v16, %v881_v18  ;;  %903 = vst [vmem:[#allocation12] sm:$0xff] %v902_v24 }
 0x215   :  { %896 = vst [vmem:[#allocation13] sm:$0xff] %v893_v19  ;;  %897 = vst [vmem:[#allocation15] sm:$0xff] %v894_v20  ;;  %905 = vxpose.xlu0.b32.start.end [1/1] (short) (narrow) %v902_v24, 8 }
 0x291   :  { %v925_v3 = vpop.trf.xlu0 }
 0x292   :  { %941 = vst [vmem:[#allocation10] sm:$0xff] %v925_v3 }
 0x295   :  { %v906_v25 = vpop.trf.xlu0 }
 0x296   :  { %922 = vst [vmem:[#allocation7] sm:$0xff] %v906_v25 }
 0x299   :  { %v951_v26 = vld [vmem:[#allocation10] sm:$0x3] }
 0x29a   :  { %953 = vst [vmem:[#allocation11] sm:$0x3] %v951_v26 }
 0x29d   :  { %v945_v27 = vld [vmem:[#allocation7] sm:$0x3] }
 0x29e   :  { %947 = vst [vmem:[#allocation8] sm:$0x3] %v945_v27 }
 0x29f   :  { %1065 = shalt.err (!%p1062_p7)
}
 0x2a0   :  { %s1066_s17 = scalar_lea.hbm %s1222_s1, 32 }
 0x2a1   :  { %p1067_p8 = scmp.ne.s32.totalorder %s1222_s1, %s1066_s17  ;;  %p1070_p9 = scmp.lt.u32.totalorder %s1066_s17, %s1222_s1 }
 0x2a3   :  { %p1072_p10 = pnand %p1070_p9, %p1067_p8 }
 0x2a5   :  { %1075 = shalt.err (!%p1072_p10)
}
 0x2a6   :  { %961 = dma.vmem_to_hbm [thread:$0]  %s959_s13, 32, %s1222_s1, [#allocation9]   ;;  %v977_v28 = vld [vmem:[#allocation11] sm:$0x3] }
 0x2a7   :  { %978 = vst [vmem:[%s1223_s2] sm:$0x3] %v977_v28 }
 0x2a8   :  { %1080 = dma.done.wait [#allocation9], 32  }
 0x2a9   :  { %1081 = vsyncadd [#allocation9], 4294967264 }
 0x2aa   :  { %994 = vsyncpa [#allocation9], 1 }

// kernel: tile.37
= control target key start
LH: loop header
LB: loop body
LE: loop exit
PB: predicated region body
PF: predicated region fallthrough
CT: control target
= control target key end

     0   :  { %s208_s0 = inlined_call_operand.vmem [shape: f32[3], index: 0, kind: input, shape index: {}]   ;;  %s209_s1 = inlined_call_operand.vmem [shape: f32[256,3], index: 1, kind: output, shape index: {}]  }
   0x1   :  { %v4_v0 = vld [vmem:[%s208_s0] ss:$0 sm:$0xff] }
   0x2   :  { %5 = vst [vmem:[%s209_s1] sm:$0xff] %v4_v0  ;;  %68 = vst [vmem:[%s209_s1 + $0x8] sm:$0xff] %v4_v0 }
   0x3   :  { %69 = vst [vmem:[%s209_s1 + $0x10] sm:$0xff] %v4_v0  ;;  %70 = vst [vmem:[%s209_s1 + $0x18] sm:$0xff] %v4_v0 }
   0x4   :  { %71 = vst [vmem:[%s209_s1 + $0x20] sm:$0xff] %v4_v0  ;;  %72 = vst [vmem:[%s209_s1 + $0x28] sm:$0xff] %v4_v0 }
   0x5   :  { %73 = vst [vmem:[%s209_s1 + $0x30] sm:$0xff] %v4_v0  ;;  %74 = vst [vmem:[%s209_s1 + $0x38] sm:$0xff] %v4_v0 }
   0x6   :  { %75 = vst [vmem:[%s209_s1 + $0x40] sm:$0xff] %v4_v0  ;;  %76 = vst [vmem:[%s209_s1 + $0x48] sm:$0xff] %v4_v0 }
   0x7   :  { %77 = vst [vmem:[%s209_s1 + $0x50] sm:$0xff] %v4_v0  ;;  %78 = vst [vmem:[%s209_s1 + $0x58] sm:$0xff] %v4_v0 }
   0x8   :  { %79 = vst [vmem:[%s209_s1 + $0x60] sm:$0xff] %v4_v0  ;;  %80 = vst [vmem:[%s209_s1 + $0x68] sm:$0xff] %v4_v0 }
   0x9   :  { %81 = vst [vmem:[%s209_s1 + $0x70] sm:$0xff] %v4_v0  ;;  %82 = vst [vmem:[%s209_s1 + $0x78] sm:$0xff] %v4_v0 }
   0xa   :  { %83 = vst [vmem:[%s209_s1 + $0x80] sm:$0xff] %v4_v0  ;;  %84 = vst [vmem:[%s209_s1 + $0x88] sm:$0xff] %v4_v0 }
   0xb   :  { %85 = vst [vmem:[%s209_s1 + $0x90] sm:$0xff] %v4_v0  ;;  %86 = vst [vmem:[%s209_s1 + $0x98] sm:$0xff] %v4_v0 }
   0xc   :  { %87 = vst [vmem:[%s209_s1 + $0xa0] sm:$0xff] %v4_v0  ;;  %88 = vst [vmem:[%s209_s1 + $0xa8] sm:$0xff] %v4_v0 }
   0xd   :  { %89 = vst [vmem:[%s209_s1 + $0xb0] sm:$0xff] %v4_v0  ;;  %90 = vst [vmem:[%s209_s1 + $0xb8] sm:$0xff] %v4_v0 }
   0xe   :  { %91 = vst [vmem:[%s209_s1 + $0xc0] sm:$0xff] %v4_v0  ;;  %92 = vst [vmem:[%s209_s1 + $0xc8] sm:$0xff] %v4_v0 }
   0xf   :  { %93 = vst [vmem:[%s209_s1 + $0xd0] sm:$0xff] %v4_v0  ;;  %94 = vst [vmem:[%s209_s1 + $0xd8] sm:$0xff] %v4_v0 }
  0x10   :  { %95 = vst [vmem:[%s209_s1 + $0xe0] sm:$0xff] %v4_v0  ;;  %96 = vst [vmem:[%s209_s1 + $0xe8] sm:$0xff] %v4_v0 }
  0x11   :  { %97 = vst [vmem:[%s209_s1 + $0xf0] sm:$0xff] %v4_v0  ;;  %98 = vst [vmem:[%s209_s1 + $0xf8] sm:$0xff] %v4_v0 }

// kernel: sub.29
= control target key start
LH: loop header
LB: loop body
LE: loop exit
PB: predicated region body
PF: predicated region fallthrough
CT: control target
= control target key end

     0   :  { %s34_s0 = inlined_call_operand.vmem [shape: f32[16], index: 0, kind: input, shape index: {}]   ;;  %s35_s1 = inlined_call_operand.vmem [shape: f32[16], index: 1, kind: input, shape index: {}]   ;;  %s36_s2 = inlined_call_operand.vmem [shape: f32[16], index: 2, kind: output, shape index: {}]  }
   0x1   :  { %v3_v0 = vld [vmem:[%s34_s0] sm:$0x1] }
   0x2   :  { %v4_v1 = vld [vmem:[%s35_s1] sm:$0x1] }
   0x3   :  { %v7_v2 = vsub.f32 %v3_v0, %v4_v1 }
   0x5   :  { %9 = vst [vmem:[%s36_s2] sm:$0x1] %v7_v2 }

// kernel: _forward.3
= control target key start
LH: loop header
LB: loop body
LE: loop exit
PB: predicated region body
PF: predicated region fallthrough
CT: control target
= control target key end

     0   :  { %v428_v1 = vmov 0.0   ;;  %vm429_vm0 = vmmov 0   ;;  %vm251_vm1 = vcmask 523264   ;;  %v296_v35 = vlaneseq  ;;  %s546_s1 = inlined_call_operand.vmem [shape: bf16[256,64], index: 1, kind: input, shape index: {}]   ;;  %s547_s0 = inlined_call_operand.vmem [shape: bf16[16,256], index: 0, kind: input, shape index: {}]   ;;  %s548_s3 = inlined_call_operand.vmem [shape: bf16[64,128], index: 3, kind: input, shape index: {}]   ;;  %s549_s2 = inlined_call_operand.vmem [shape: f32[1,64], index: 2, kind: input, shape index: {}]   ;;  %s550_s4 = inlined_call_operand.vmem [shape: f32[1,128], index: 4, kind: input, shape index: {}]   ;;  %s551_s5 = inlined_call_operand.vmem [shape: f32[16,128], index: 5, kind: output, shape index: {}]  }
   0x1   :  { %v397_v0 = vld [vmem:[%s546_s1 + $0x40] sm:$0xff]   ;;  %383 = vmatprep.subr.bf16.mxu1 %v428_v1  ;;  %v399_v3 = vld [vmem:[%s546_s1 + $0x48] sm:$0xff]   ;;  %v401_v5 = vld [vmem:[%s546_s1 + $0x50] sm:$0xff]   ;;  %391 = vmatprep.mubr.msk.bf16.mxu1 %vm429_vm0, %v428_v1 }
   0x2   :  { %v398_v2 = vld [vmem:[%s546_s1] sm:$0xff]   ;;  %356 = vmatprep.subr.bf16.mxu0 %v397_v0  ;;  %v400_v4 = vld [vmem:[%s546_s1 + $0x8] sm:$0xff]   ;;  %v402_v6 = vld [vmem:[%s546_s1 + $0x10] sm:$0xff]   ;;  %v297_v36 = vand.u32 127, %v296_v35 }
   0x3   :  { %357 = vmatpush3.bf16.msra.mxu0 %v398_v2  ;;  %v403_v7 = vld [vmem:[%s546_s1 + $0x58] sm:$0xff]   ;;  %v405_v9 = vld [vmem:[%s546_s1 + $0x60] sm:$0xff]   ;;  %v407_v11 = vld [vmem:[%s546_s1 + $0x68] sm:$0xff]  }
   0x4   :  { %358 = vmatprep.subr.bf16.mxu0 %v399_v3  ;;  %v404_v8 = vld [vmem:[%s546_s1 + $0x18] sm:$0xff]   ;;  %v406_v10 = vld [vmem:[%s546_s1 + $0x20] sm:$0xff]   ;;  %v408_v12 = vld [vmem:[%s546_s1 + $0x28] sm:$0xff]   ;;  %vm298_vm2 = vcmp.lt.s32.totalorder %v297_v36, 5 }
   0x5   :  { %v415_v13 = vld [vmem:[%s547_s0 + $0x4] ss:$8 sps:$4 sm:$0xff]   ;;  %v409_v15 = vld [vmem:[%s546_s1 + $0x70] sm:$0xff]   ;;  %v411_v17 = vld [vmem:[%s546_s1 + $0x78] sm:$0xff]  }
   0x6   :  { %v416_v14 = vld [vmem:[%s548_s3] sm:$0xff]   ;;  %200 = vmatprep.mubr.bf16.mxu0 %v415_v13  ;;  %v410_v16 = vld [vmem:[%s546_s1 + $0x30] sm:$0xff]   ;;  %v412_v18 = vld [vmem:[%s546_s1 + $0x38] sm:$0xff]  }
   0x7   :  { %359 = vmatpush3.bf16.msra.mxu0 %v400_v4  ;;  %384 = vmatpush3.bf16.msra.mxu1 %v416_v14  ;;  %v413_v19 = vld [vmem:[%s547_s0] ss:$8 sps:$4 sm:$0xff]   ;;  %v418_v21 = vld [vmem:[%s548_s3 + $0x10] sm:$0xff]   ;;  %v419_v22 = vld [vmem:[%s548_s3 + $0x18] sm:$0xff]  }
   0x8   :  { %360 = vmatprep.subr.bf16.mxu0 %v401_v5  ;;  %385 = vmatprep.subr.bf16.mxu1 %v428_v1  ;;  %v417_v20 = vld [vmem:[%s548_s3 + $0x8] sm:$0xff]   ;;  %v331_v24 = vld [vmem:[%s549_s2] ss:$0 sm:$0xff] }
   0x9   :  { %v350_v37 = vld [vmem:[%s550_s4] ss:$0 sm:$0xff] }
   0xb   :  { %361 = vmatpush3.bf16.msra.mxu0 %v402_v6  ;;  %386 = vmatpush3.bf16.msra.mxu1 %v417_v20 }
   0xc   :  { %362 = vmatprep.subr.bf16.mxu0 %v403_v7  ;;  %387 = vmatprep.subr.bf16.mxu1 %v428_v1 }
   0xf   :  { %363 = vmatpush3.bf16.msra.mxu0 %v404_v8  ;;  %388 = vmatpush3.bf16.msra.mxu1 %v418_v21 }
  0x10   :  { %364 = vmatprep.subr.bf16.mxu0 %v405_v9  ;;  %389 = vmatprep.subr.bf16.mxu1 %v428_v1 }
  0x13   :  { %365 = vmatpush3.bf16.msra.mxu0 %v406_v10  ;;  %390 = vmatpush3.bf16.msra.mxu1 %v419_v22 }
  0x14   :  { %366 = vmatprep.subr.bf16.mxu0 %v407_v11 }
  0x17   :  { %367 = vmatpush3.bf16.msra.mxu0 %v408_v12 }
  0x18   :  { %368 = vmatprep.subr.bf16.mxu0 %v409_v15 }
  0x1b   :  { %369 = vmatpush3.bf16.msra.mxu0 %v410_v16 }
  0x1c   :  { %370 = vmatprep.subr.bf16.mxu0 %v411_v17 }
  0x1f   :  { %371 = vmatpush3.bf16.msra.mxu0 %v412_v18 }
  0x22   :  { %201 = vmatmul.mubr.bf16.vlgmr.msra.gmra.mrb[0].mxu0 %v413_v19 }
  0xf5   :  { %v372_v23 = vpop.f32.mrb[0].mxu0 }
  0xf6   :  { %v373_v25 = vpop.f32.mrb[1].mxu0 }
  0xf7   :  { %v374_v26 = vadd.f32 %v373_v25, %v372_v23  ;;  %v375_v27 = vpop.f32.mrb[2].mxu0 }
  0xf8   :  { %v376_v28 = vpop.f32.mrb[3].mxu0 }
  0xf9   :  { %v203_v29 = vadd.f32 %v374_v26, %v331_v24  ;;  %v377_v30 = vadd.f32 %v376_v28, %v375_v27 }
  0xfb   :  { %v206_v31 = vadd.f32 %v377_v30, %v331_v24  ;;  %v209_v32 = vmax.f32 %v203_v29, 0.0 }
  0xfd   :  { %v210_v33 = vmax.f32 %v206_v31, 0.0 }
  0xff   :  { %v211_v34 = vpack.c.bf16 %v210_v33, %v209_v32 }
 0x101   :  { %392 = vmatmul.mubr.msk.bf16.vlgmr.msra.gmra.mrb[0].mxu1 %vm251_vm1, %v211_v34 }
 0x1d4   :  { %v289_v38 = vpop.f32.mrb[0].mxu1 }
 0x1d5   :  { %v290_v39 = vadd.f32 %v350_v37, %v289_v38  ;;  %v393_v40 = vpop.f32.mrb[1].mxu1 }
 0x1d6   :  { %v292_v41 = vpop.f32.mrb[2].mxu1 }
 0x1d7   :  { %v293_v42 = vadd.f32 %v350_v37, %v292_v41  ;;  %v394_v43 = vpop.f32.mrb[3].mxu1  ;;  %v299_v44 = vsel %vm298_vm2, %v290_v39, -1e+30 }
 0x1d8   :  { %301 = vmax.xlane.f32.xlu0 %v299_v44 }
 0x1d9   :  { %v300_v45 = vsel %vm298_vm2, %v293_v42, -1e+30 }
 0x1dc   :  { %303 = vmax.xlane.f32.xlu0 %v300_v45 }
 0x265   :  { %v302_v46 = vpop.xlane.xlu0 %301 }
 0x266   :  { %v305_v47 = vsub.f32 %v290_v39, %v302_v46 }
 0x268   :  { %v307_v48 = vsel %vm298_vm2, %v305_v47, 0.0 }
 0x269   :  { %v309_v49 = vmul.f32 1.442695, %v307_v48  ;;  %v304_v50 = vpop.xlane.xlu0 %303 }
 0x26a   :  { %v306_v51 = vsub.f32 %v293_v42, %v304_v50 }
 0x26b   :  { %420 = vpow2.f32 %v309_v49 }
 0x26c   :  { %v308_v52 = vsel %vm298_vm2, %v306_v51, 0.0 }
 0x26d   :  { %v311_v53 = vmul.f32 1.442695, %v308_v52 }
 0x26f   :  { %422 = vpow2.f32 %v311_v53 }
 0x275   :  { %v421_v54 = vpop.eup %420 }
 0x276   :  { %v313_v55 = vsel %vm298_vm2, %v421_v54, 0.0 }
 0x277   :  { %315 = vadd.xlane.f32.xlu1 %v313_v55 }
 0x279   :  { %v423_v56 = vpop.eup %422 }
 0x27a   :  { %v314_v57 = vsel %vm298_vm2, %v423_v56, 0.0 }
 0x27b   :  { %317 = vadd.xlane.f32.xlu1 %v314_v57 }
 0x304   :  { %v316_v58 = vpop.xlane.xlu1 %315 }
 0x305   :  { %424 = vrcp.f32 %v316_v58 }
 0x308   :  { %v318_v59 = vpop.xlane.xlu1 %317 }
 0x309   :  { %426 = vrcp.f32 %v318_v59 }
 0x30f   :  { %v425_v60 = vpop.eup %424 }
 0x310   :  { %v321_v61 = vmul.f32 %v425_v60, %v313_v55 }
 0x312   :  { %v323_v62 = vsel %vm298_vm2, %v321_v61, %v290_v39 }
 0x313   :  { %v427_v63 = vpop.eup %426  ;;  %325 = vst [vmem:[%s551_s5] sm:$0xff] %v323_v62 }
 0x314   :  { %v322_v0 = vmul.f32 %v427_v63, %v314_v57 }
 0x316   :  { %v324_v1 = vsel %vm298_vm2, %v322_v0, %v293_v42 }
 0x317   :  { %326 = vst [vmem:[%s551_s5 + $0x8] sm:$0xff] %v324_v1 }

</bundles_post_ra>
